<compile_context>
chip_gen: v5e
topology: v5e:2x2
jax: 0.10.0
libtpu: 0.0.40
codegen_flags: <defaults>
</compile_context>

<pallas_src>
import jax
import jax.numpy as jnp
from jax.experimental import pallas as pl
from jax.experimental.pallas import tpu as pltpu


LANE = 128


def _round_up(n, m):
    return ((n + m - 1) // m) * m


def _vmem_capacity_bytes():
    try:
        return int(pltpu.get_tpu_info().vmem_capacity_bytes)
    except Exception:
        return 64 << 20  # conservative (v7x-sized) fallback


def _choose_tiles(B, F, vmem_cap):
    """Pick (tm, tf) from a VMEM byte budget (perf review item 1/2/6/7)."""
    # Per-buffer byte budget for the streamed x tile (double-buffered by the
    # pipeline):  ~4 MiB on v7x (64 MiB VMEM), 8 MiB on v5e/v6e (128 MiB).
    target = min(8 << 20, max(1 << 20, vmem_cap // 16))

    # Feature tile: keep the whole feature axis in one block unless even a
    # 512-row tile would blow the budget; only split on a multiple-of-128
    # divisor of F so the lane reduction never sees padded (garbage) lanes.
    tf = F
    if 4 * 512 * F > target and F % LANE == 0:
        max_tf = max(LANE, (target // (4 * 512)) // LANE * LANE)
        tf = LANE  # always divides F here
        cand = max_tf
        while cand >= LANE:
            if F % cand == 0:
                tf = cand
                break
            cand -= LANE

    # Batch tile: fill the budget, multiple of 128 (lane-dense (1, tm) output
    # row + full sublanes), no larger than the lane-rounded batch itself.
    tm = (target // (4 * tf)) // LANE * LANE
    tm = max(LANE, min(tm, _round_up(B, LANE)))

    # Keep >= 2 batch blocks when possible so dimension_semantics=("parallel",
    # ...) can shard the batch across both TensorCores on v7x (one extra
    # ~0.35 us step on 1-TC chips is noise).
    b_lanes = _round_up(B, LANE)
    if tm >= b_lanes and b_lanes >= 2 * LANE:
        tm = _round_up(b_lanes // 2, LANE)

    return tm, tf


def _logistic_kernel(w_ref, x_ref, out_ref, acc_ref):
    # w_ref:  (1, tf)  broadcast weights slice
    # x_ref:  (tm, tf) batch tile (last batch block may contain stale rows;
    #                  the wrapper slices them off)
    # out_ref:(1, tm)  lane-dense probability row for this batch block
    # acc_ref:(1, tm)  f32 logit accumulator across the feature-axis grid
    k = pl.program_id(1)

    @pl.when(k == 0)
    def _():
        acc_ref[...] = jnp.zeros_like(acc_ref)

    w = w_ref[...]
    x = x_ref[...]
    # Upcast only when needed (e.g. bf16 inputs on v5e, whose VPU has no bf16
    # path); no-op for f32.
    if w.dtype != jnp.float32:
        w = w.astype(jnp.float32)
    if x.dtype != jnp.float32:
        x = x.astype(jnp.float32)

    # VPU elementwise multiply + XLU reduction over the feature (lane) axis.
    partial = jnp.sum(x * w, axis=1)          # (tm,)
    # Sublane->lane relayout into the accumulator row.  At very large tm this
    # is VMEM-materialized but still hidden under the HBM DMA; if bundle
    # analysis ever shows ld/st slot pressure here, chunk this in 8-row groups
    # with lax.fori_loop(..., unroll=True).
    acc_ref[...] += partial[None, :]

    @pl.when(k == pl.num_programs(1) - 1)
    def _():
        z = acc_ref[...]
        # exp on the EUP; explicit formula keeps the lowering trivially
        # supported and matches torch.sigmoid to ~1 ulp.
        probs = 1.0 / (1.0 + jnp.exp(-z))
        out_ref[...] = probs.astype(out_ref.dtype)


def logistic_classifier_forward(weights, x, *, prefer_pallas=None):
    """weights: (F,).  x: (F,) single sample or (B, F) batch.

    Returns a scalar probability for a single sample (exact
    TorchLogisticClassifier.forward semantics) or a (B,) float32 vector.
    """
    weights = jnp.asarray(weights)
    x = jnp.asarray(x)
    single = x.ndim == 1
    xb = x[None, :] if single else x
    B, F = xb.shape
    assert weights.shape == (F,)

    # Tiny problems (and the exact Torch single-vector path) are pure launch /
    # DMA-setup overhead for a custom kernel -- plain XLA is strictly faster.
    tiny = single or (B * F * 4) <= (1 << 20)
    use_pallas = (not tiny) if prefer_pallas is None else prefer_pallas
    if not use_pallas:
        probs = jax.nn.sigmoid(
            xb.astype(jnp.float32) @ weights.astype(jnp.float32))
        return probs[0] if single else probs

    vmem_cap = _vmem_capacity_bytes()
    tm, tf = _choose_tiles(B, F, vmem_cap)
    nb = pl.cdiv(B, tm)       # batch blocks (last one may be partial -- no pad)
    nf = F // tf              # tf divides F by construction
    b_out = nb * tm           # lane-padded output allocation only (tiny)

    # Explicit scoped-VMEM limit: double-buffered x tile + elementwise
    # temporaries + (1, tf)/(1, tm) buffers (stored as 8-sublane tiles) +
    # compiler scratch margin.  Needed on v5e (16 MiB scoped default) and kept
    # within 0.9x physical on v7x (64 MiB).
    x_bytes = 4 * tm * tf
    vmem_need = (4 * x_bytes
                 + 2 * 8 * tf * 4
                 + 3 * 8 * tm * 4
                 + (2 << 20))
    vmem_limit = min(int(vmem_cap * 0.9), max(vmem_need, 32 << 20))

    out = pl.pallas_call(
        _logistic_kernel,
        out_shape=jax.ShapeDtypeStruct((1, b_out), jnp.float32),
        grid_spec=pltpu.PrefetchScalarGridSpec(
            num_scalar_prefetch=0,
            grid=(nb, nf),
            in_specs=[
                # Weights: constant block index along the batch axis, so the
                # Pallas pipeline does not re-DMA it per batch block.
                pl.BlockSpec((1, tf), lambda i, k: (0, k)),
                # x batch tile; last batch block is a clipped partial read.
                pl.BlockSpec((tm, tf), lambda i, k: (i, k)),
            ],
            out_specs=pl.BlockSpec((1, tm), lambda i, k: (0, i)),
            scratch_shapes=[pltpu.VMEM((1, tm), jnp.float32)],
        ),
        compiler_params=pltpu.CompilerParams(
            dimension_semantics=("parallel", "arbitrary"),
            vmem_limit_bytes=vmem_limit,
        ),
        cost_estimate=pl.CostEstimate(
            flops=2 * B * F,
            transcendentals=B,
            bytes_accessed=4 * (B * F + F + B),
        ),
    )(weights.reshape(1, F), xb)

    probs = out[0, :B]
    return probs[0] if single else probs


if __name__ == "__main__":
    num_features = 32   # "hidden=32" style small shape

    key = jax.random.PRNGKey(0)
    k_x, k_w, k_xb = jax.random.split(key, 3)

    # Parameters: nn.Parameter(torch.zeros(num_features)) -> zeros at init;
    # also exercise non-trivial weights so the dot product is really tested.
    weights_init = jnp.zeros((num_features,), dtype=jnp.float32)
    weights_rand = jax.random.normal(k_w, (num_features,), dtype=jnp.float32)

    x_small = jax.random.normal(k_x, (2, num_features), dtype=jnp.float32)
    # Ragged batch (not a multiple of 128) to exercise the no-pad partial
    # last block in the Pallas path.
    x_big = jax.random.normal(k_xb, (300, num_features), dtype=jnp.float32)

    for w in (weights_init, weights_rand):
        ref_small = jax.nn.sigmoid(x_small @ w)
        ref_big = jax.nn.sigmoid(x_big @ w)

        # Exact Torch single-vector semantics (plain-JAX fast path).
        p0 = jax.block_until_ready(logistic_classifier_forward(w, x_small[0]))
        assert jnp.allclose(p0, ref_small[0], atol=1e-5), (p0, ref_small[0])

        # Tiny batch: auto fallback path.
        ps = jax.block_until_ready(logistic_classifier_forward(w, x_small))
        assert ps.shape == (2,)
        assert jnp.allclose(ps, ref_small, atol=1e-5), (ps, ref_small)

        # Batched Pallas kernel (forced, since the demo batch is small).
        pb = jax.block_until_ready(
            logistic_classifier_forward(w, x_big, prefer_pallas=True))
        assert pb.shape == (300,)
        assert jnp.allclose(pb, ref_big, atol=1e-5), (pb, ref_big)

    print("KERNEL_OK")
</pallas_src>

<mosaic_0001>
module attributes {stable_mosaic.version = 11 : i64} {
  func.func @_logistic_kernel(%arg0: i32, %arg1: i32, %arg2: memref<1x32xf32, #tpu.memory_space<vmem>>, %arg3: memref<256x32xf32, #tpu.memory_space<vmem>>, %arg4: memref<1x256xf32, #tpu.memory_space<vmem>>, %arg5: memref<1x256xf32, #tpu.memory_space<vmem>>) attributes {dimension_semantics = [#tpu.dimension_semantics<parallel>, #tpu.dimension_semantics<arbitrary>], iteration_bounds = array<i64: 2, 1>, scalar_prefetch = 0 : i64, scratch_operands = 1 : i64, tpu.core_type = #tpu.core_type<tc>, window_params = [{transform_indices = @transform_0, window_bounds = array<i64: 1, 32>}, {transform_indices = @transform_1, window_bounds = array<i64: 256, 32>}, {transform_indices = @transform_2, window_bounds = array<i64: 1, 256>}]} {
    %c0_i32 = arith.constant 0 : i32
    %0 = arith.cmpi eq, %arg1, %c0_i32 : i32
    %1 = arith.extui %0 : i1 to i32
    %c0_i32_0 = arith.constant 0 : i32
    %2 = arith.cmpi ne, %1, %c0_i32_0 : i32
    scf.if %2 {
      %cst_10 = arith.constant 0.000000e+00 : f32
      %15 = vector.broadcast %cst_10 : f32 to vector<1x256xf32>
      %c0_11 = arith.constant 0 : index
      %c0_12 = arith.constant 0 : index
      %16 = vector.load %arg5[%c0_11, %c0_12] : memref<1x256xf32, #tpu.memory_space<vmem>>, vector<1x256xf32>
      tpu.vector_store %arg5[%c0_11, %c0_12], %15 {strides = array<i32>} : memref<1x256xf32, #tpu.memory_space<vmem>>, vector<1x256xf32>,
    } else {
    }
    %c0 = arith.constant 0 : index
    %c0_1 = arith.constant 0 : index
    %3 = vector.load %arg2[%c0, %c0_1] : memref<1x32xf32, #tpu.memory_space<vmem>>, vector<1x32xf32>
    %c0_2 = arith.constant 0 : index
    %c0_3 = arith.constant 0 : index
    %4 = vector.load %arg3[%c0_2, %c0_3] : memref<256x32xf32, #tpu.memory_space<vmem>>, vector<256x32xf32>
    %5 = vector.broadcast %3 : vector<1x32xf32> to vector<256x32xf32>
    %6 = arith.mulf %4, %5 : vector<256x32xf32>
    %cst = arith.constant dense<0.000000e+00> : vector<256xf32>
    %7 = vector.multi_reduction <add>, %6, %cst [1] : vector<256x32xf32> to vector<256xf32>
    %c0_4 = arith.constant 0 : index
    %c0_5 = arith.constant 0 : index
    %8 = vector.load %arg5[%c0_4, %c0_5] : memref<1x256xf32, #tpu.memory_space<vmem>>, vector<1x256xf32>
    %9 = vector.shape_cast %7 : vector<256xf32> to vector<1x256xf32>
    %10 = arith.addf %8, %9 : vector<1x256xf32>
    %c0_6 = arith.constant 0 : index
    %c0_7 = arith.constant 0 : index
    %11 = vector.load %arg5[%c0_6, %c0_7] : memref<1x256xf32, #tpu.memory_space<vmem>>, vector<1x256xf32>
    tpu.vector_store %arg5[%c0_6, %c0_7], %10 {strides = array<i32>} : memref<1x256xf32, #tpu.memory_space<vmem>>, vector<1x256xf32>,
    %c0_i32_8 = arith.constant 0 : i32
    %12 = arith.cmpi eq, %arg1, %c0_i32_8 : i32
    %13 = arith.extui %12 : i1 to i32
    %c0_i32_9 = arith.constant 0 : i32
    %14 = arith.cmpi ne, %13, %c0_i32_9 : i32
    scf.if %14 {
      %c0_10 = arith.constant 0 : index
      %c0_11 = arith.constant 0 : index
      %15 = vector.load %arg5[%c0_10, %c0_11] : memref<1x256xf32, #tpu.memory_space<vmem>>, vector<1x256xf32>
      %cst_12 = arith.constant 0.000000e+00 : f32
      %16 = vector.broadcast %cst_12 : f32 to vector<1x256xf32>
      %17 = arith.subf %16, %15 : vector<1x256xf32>
      %18 = math.exp %17 : vector<1x256xf32>
      %cst_13 = arith.constant 1.000000e+00 : f32
      %19 = vector.broadcast %cst_13 : f32 to vector<1x256xf32>
      %20 = arith.addf %19, %18 : vector<1x256xf32>
      %cst_14 = arith.constant 1.000000e+00 : f32
      %21 = vector.broadcast %cst_14 : f32 to vector<1x256xf32>
      %22 = arith.divf %21, %20 : vector<1x256xf32>
      %c0_15 = arith.constant 0 : index
      %c0_16 = arith.constant 0 : index
      %23 = vector.load %arg4[%c0_15, %c0_16] : memref<1x256xf32, #tpu.memory_space<vmem>>, vector<1x256xf32>
      tpu.vector_store %arg4[%c0_15, %c0_16], %22 {strides = array<i32>} : memref<1x256xf32, #tpu.memory_space<vmem>>, vector<1x256xf32>,
    } else {
    }
    return
  }
  func.func @transform_0(%arg0: i32, %arg1: i32) -> (i32, i32) {
    %c0_i32 = arith.constant 0 : i32
    %c0_i32_0 = arith.constant 0 : i32
    return %c0_i32, %arg1 : i32, i32
  }
  func.func @transform_1(%arg0: i32, %arg1: i32) -> (i32, i32) {
    %c0_i32 = arith.constant 0 : i32
    return %arg0, %arg1 : i32, i32
  }
  func.func @transform_2(%arg0: i32, %arg1: i32) -> (i32, i32) {
    %c0_i32 = arith.constant 0 : i32
    %c0_i32_0 = arith.constant 0 : i32
    return %c0_i32, %arg0 : i32, i32
  }
}

</mosaic_0001>

<bundles_post_ra>
// kernel: tpu_custom_call.1
= control target key start
LH: loop header
LB: loop body
LE: loop exit
PB: predicated region body
PF: predicated region fallthrough
CT: control target
= control target key end

     0   :  { %7 = vsyncpa [#allocation4], 0  ;;  %s1871_s0 = inlined_call_operand.vmem [shape: f32[1,32], index: 0, kind: input, shape index: {}]   ;;  %s1872_s1 = inlined_call_operand.vmem [shape: f32[300,32], index: 1, kind: input, shape index: {}]   ;;  %s1873_s2 = inlined_call_operand.hbm [shape: f32[1,512], index: 2, kind: output, shape index: {}]  }
   0x1   :  { %9 = vsyncpa [#allocation4 + $0x1], 0  ;;  %s1457_s9 = smov 0   ;;  %s1459_s10 = smov 0  }
   0x2   :  { %s1461_s11 = smov 0   ;;  %s1463_s12 = smov 0  }
   0x3   :  { %s1465_s13 = smov 0   ;;  %s1467_s14 = smov 0  }
   0x4 LB: > { %s1282_s15 = sadd.s32 4294967295, %s1438_s14   ;;  %s1283_s16 = sadd.s32 4294967294, %s1438_s14   ;;  %s1438_s14 = sphi %s1467_s14, %s15_s14   ;;  %s1434_s13 = sphi %s1465_s13, %s1882_s13   ;;  %s1430_s12 = sphi %s1463_s12, %s1881_s12   ;;  %s1426_s11 = sphi %s1461_s11, %s1880_s11   ;;  %s1422_s10 = sphi %s1459_s10, %s1879_s10   ;;  %s1418_s9 = sphi %s1457_s9, %s1878_s9  }
   0x5   : > { %s27_s17 = sadd.s32 1, %s1434_s13  ;;  %s88_s18 = sadd.s32 1, %s1426_s11 }
   0x6   : > { %p29_p0 = scmp.ge.s32.totalorder %s27_s17, 2  ;;  %p98_p1 = scmp.ne.s32.totalorder %s1426_s11, %s1422_s10 }
   0x7   : > { %p99_p2 = scmp.eq.s32.totalorder %s1282_s15, 1  ;;  %p104_p3 = scmp.ne.s32.totalorder %s1422_s10, %s1418_s9 }
   0x8   : > { %s1884_s17 = smov (%p29_p0, %s27_s17), 0  ;;  %p105_p5 = scmp.eq.s32.totalorder %s1283_s16, 1 }
   0x9   : > { %p1497_p4 = por %p99_p2, %p98_p1  ;;  %s85_s20 = ssub.s32 %s1434_s13, %s1884_s17 }
   0xa   : > { %p1287_p6 = scmp.ge.s32.totalorder %s1438_s14, 1  ;;  %p86_p7 = scmp.eq.s32.totalorder %s85_s20, 0 }
   0xb   : > { %p1504_p8 = por %p105_p5, %p104_p3  ;;  %p149_p9 = scmp.lt.s32.totalorder %s1438_s14, 3 }
   0xc   : > { %s1510_s22 = scalar_select %p86_p7, %s1426_s11, %s88_s18  }
   0xd   : > { %p150_p10 = pnand %p1287_p6, %p149_p9 }
   0xe   : > { %s1289_s23 = sshll.u32 (!%p150_p10), %s1430_s12, 5  ;;  %s178_s30 = sand.u32 (!%p150_p10), 1, %s1422_s10  }
   0xf   : > { %153 = sbr.rel (%p150_p10) target bundleno = 789 (0x315), region = 28  ;;  %p189_p11 = scmp.lt.s32.totalorder (!%p150_p10), %s1289_s23, 37 }
  0x10   : > { %s1288_s3 = sshll.u32 (!%p150_p10), %s178_s30, 1  ;;  %s1292_s4 = sshll.u32 (!%p150_p10), %s1430_s12, 1 }
  0x11   : > { %s1195_s7 = scalar_lea.hbm (!%p150_p10), %s1873_s2, %s1292_s4  ;;  %s180_s8 = scalar_lea.vmem (!%p150_p10), [#allocation3], %s1288_s3 }
  0x12   : > { %s1197_s15 = sshll.u32 (!%p150_p10), %s180_s8, 4  ;;  %s1199_s16 = sshll.u32 (!%p150_p10), %s1195_s7, 4  ;;  %s1198_s15 = int_to_ptr.vmem [resolvable:$true] %s1197_s15  ;;  %s1200_s16 = int_to_ptr.hbm [resolvable:$true] %s1199_s16 }
  0x13   : > { %s1185_s12 = scalar_lea.sflag (!%p150_p10), [#allocation4], %s178_s30  ;;  %s1374_s18 = sshra.s32 (!%p150_p10), %s1200_s16, 4  ;;  %s1375_s18 = int_to_ptr.hbm [resolvable:$true] %s1374_s18 }
  0x14   : > { %s1886_s23 = smov (!%p189_p11, %s1289_s23), 37  ;;  %v1516_v0 = vld [vmem:[%s1871_s0] ss:$0 sm:$0xff]  ;;  %vm279_vm0 = vcmask 261120   ;;  %vm1061_vm1 = vcmask 130112   ;;  %vm1065_vm2 = vcmask 195712   ;;  %p1381_p1 = scmp.lt.s32.totalorder %s1375_s18, %s1873_s2 }
  0x15   : > { %s1290_s26 = sshll.u32 %s1886_s23, 3  ;;  %vm1069_vm3 = vcmask 261312   ;;  %vm1073_vm4 = vcmask 326912   ;;  %vm1077_vm5 = vcmask 392512   ;;  %vm1081_vm7 = vcmask 458112   ;;  %s1376_s20 = scalar_lea.hbm %s1375_s18, 2 }
  0x16   : > { %s1521_s29 = scalar_lea.vmem %s1872_s1, %s1290_s26  ;;  %vm1085_vm8 = vcmask 523712   ;;  %vm1089_vm9 = vcmask 589312   ;;  %vm1093_vm10 = vcmask 654912   ;;  %vm1097_vm11 = vcmask 720512   ;;  %p1377_p12 = scmp.ne.s32.totalorder %s1375_s18, %s1376_s20 }
  0x17   : > { %v212_v1 = vld [vmem:[%s1521_s29] sm:$0xff]  ;;  %v214_v2 = vld [vmem:[%s1521_s29 + $0x10] sm:$0xff]  ;;  %v213_v6 = vld [vmem:[%s1521_s29 + $0x8] sm:$0xff]  ;;  %vm1101_vm12 = vcmask 786112   ;;  %vm1105_vm13 = vcmask 851712   ;;  %vm1109_vm14 = vcmask 917312  }
  0x18   : > { %v247_v3 = vmul.f32 %v1516_v0, %v212_v1  ;;  %v249_v4 = vmul.f32 %v1516_v0, %v214_v2  ;;  %v216_v5 = vld [vmem:[%s1521_s29 + $0x20] sm:$0xff]  ;;  %v215_v8 = vld [vmem:[%s1521_s29 + $0x18] sm:$0xff]  ;;  %v217_v11 = vld [vmem:[%s1521_s29 + $0x28] sm:$0xff]  ;;  %v248_v13 = vmul.f32 %v1516_v0, %v213_v6  ;;  %vm1113_vm15 = vcmask 982912   ;;  %p1378_p13 = pnand %p1377_p12, %p1497_p4  ;;  %s1380_s25 = scalar_lea.hbm %s1873_s2, 4 }
  0x19   : > { %v251_v7 = vmul.f32 %v1516_v0, %v216_v5  ;;  %v250_v14 = vmul.f32 %v1516_v0, %v215_v8  ;;  %v252_v15 = vmul.f32 %v1516_v0, %v217_v11  ;;  %v218_v19 = vld [vmem:[%s1521_s29 + $0x30] sm:$0xff]  ;;  %v219_v20 = vld [vmem:[%s1521_s29 + $0x38] sm:$0xff]  ;;  %v220_v21 = vld [vmem:[%s1521_s29 + $0x40] sm:$0xff]  ;;  %p1382_p2 = scmp.lt.s32.totalorder %s1380_s25, %s1376_s20 }
  0x1a   : > { %v280_v9 = vsel %vm279_vm0, %v247_v3, 0.0  ;;  %v286_v10 = vsel %vm279_vm0, %v249_v4, 0.0  ;;  %v283_v16 = vsel %vm279_vm0, %v248_v13, 0.0  ;;  %v253_v22 = vmul.f32 %v1516_v0, %v218_v19  ;;  %v221_v28 = vld [vmem:[%s1521_s29 + $0x48] sm:$0xff]  ;;  %v222_v29 = vld [vmem:[%s1521_s29 + $0x50] sm:$0xff]  ;;  %v223_v30 = vld [vmem:[%s1521_s29 + $0x58] sm:$0xff]  ;;  %p1379_p0 = pneg %p1378_p13 }
  0x1b   : > { %281 = vadd.xlane.f32.xlu0 %v280_v9  ;;  %287 = vadd.xlane.f32.xlu1 %v286_v10  ;;  %v292_v12 = vsel %vm279_vm0, %v251_v7, 0.0  ;;  %v289_v17 = vsel %vm279_vm0, %v250_v14, 0.0  ;;  %v295_v18 = vsel %vm279_vm0, %v252_v15, 0.0  ;;  %v254_v23 = vmul.f32 %v1516_v0, %v219_v20  ;;  %v224_v37 = vld [vmem:[%s1521_s29 + $0x60] sm:$0xff]  ;;  %v225_v38 = vld [vmem:[%s1521_s29 + $0x68] sm:$0xff]  ;;  %v226_v39 = vld [vmem:[%s1521_s29 + $0x70] sm:$0xff]  ;;  %p1383_p3 = por %p1382_p2, %p1381_p1 }
  0x1c   : > { %293 = vadd.xlane.f32.xlu2 %v292_v12  ;;  %v255_v24 = vmul.f32 %v1516_v0, %v220_v21  ;;  %v298_v25 = vsel %vm279_vm0, %v253_v22, 0.0  ;;  %v256_v31 = vmul.f32 %v1516_v0, %v221_v28  ;;  %v257_v32 = vmul.f32 %v1516_v0, %v222_v29  ;;  %v227_v46 = vld [vmem:[%s1521_s29 + $0x78] sm:$0xff]  ;;  %v228_v47 = vld [vmem:[%s1521_s29 + $0x80] sm:$0xff]  ;;  %v229_v48 = vld [vmem:[%s1521_s29 + $0x88] sm:$0xff] }
  0x1d   : > { %v301_v26 = vsel %vm279_vm0, %v254_v23, 0.0  ;;  %v258_v33 = vmul.f32 %v1516_v0, %v223_v30  ;;  %v259_v40 = vmul.f32 %v1516_v0, %v224_v37  ;;  %v260_v41 = vmul.f32 %v1516_v0, %v225_v38  ;;  %v230_v55 = vld [vmem:[%s1521_s29 + $0x90] sm:$0xff]  ;;  %v231_v56 = vld [vmem:[%s1521_s29 + $0x98] sm:$0xff]  ;;  %v232_v57 = vld [vmem:[%s1521_s29 + $0xa0] sm:$0xff]  ;;  %p1384_p5 = pnand %p1383_p3, %p1379_p0 }
  0x1e   : > { %v304_v27 = vsel %vm279_vm0, %v255_v24, 0.0  ;;  %v307_v34 = vsel %vm279_vm0, %v256_v31, 0.0  ;;  %v310_v35 = vsel %vm279_vm0, %v257_v32, 0.0  ;;  %v261_v42 = vmul.f32 %v1516_v0, %v226_v39  ;;  %v233_v1 = vld [vmem:[%s1521_s29 + $0xa8] sm:$0xff]  ;;  %v234_v2 = vld [vmem:[%s1521_s29 + $0xb0] sm:$0xff]  ;;  %v235_v3 = vld [vmem:[%s1521_s29 + $0xb8] sm:$0xff] }
  0x1f   : > { %v313_v36 = vsel %vm279_vm0, %v258_v33, 0.0  ;;  %v316_v43 = vsel %vm279_vm0, %v259_v40, 0.0  ;;  %v319_v44 = vsel %vm279_vm0, %v260_v41, 0.0  ;;  %v262_v49 = vmul.f32 %v1516_v0, %v227_v46  ;;  %v236_v10 = vld [vmem:[%s1521_s29 + $0xc0] sm:$0xff]  ;;  %v237_v11 = vld [vmem:[%s1521_s29 + $0xc8] sm:$0xff]  ;;  %v238_v12 = vld [vmem:[%s1521_s29 + $0xd0] sm:$0xff] }
  0x20   : > { %v322_v45 = vsel %vm279_vm0, %v261_v42, 0.0  ;;  %v263_v50 = vmul.f32 %v1516_v0, %v228_v47  ;;  %v264_v51 = vmul.f32 %v1516_v0, %v229_v48  ;;  %v265_v58 = vmul.f32 %v1516_v0, %v230_v55  ;;  %v239_v19 = vld [vmem:[%s1521_s29 + $0xd8] sm:$0xff]  ;;  %v240_v20 = vld [vmem:[%s1521_s29 + $0xe0] sm:$0xff]  ;;  %v241_v21 = vld [vmem:[%s1521_s29 + $0xe8] sm:$0xff] }
  0x21   : > { %v325_v52 = vsel %vm279_vm0, %v262_v49, 0.0  ;;  %v266_v59 = vmul.f32 %v1516_v0, %v231_v56  ;;  %v267_v60 = vmul.f32 %v1516_v0, %v232_v57  ;;  %v268_v4 = vmul.f32 %v1516_v0, %v233_v1  ;;  %v242_v28 = vld [vmem:[%s1521_s29 + $0xf0] sm:$0xff]  ;;  %v243_v31 = vld [vmem:[%s1521_s29 + $0xf8] sm:$0xff] }
  0x22   : > { %v328_v53 = vsel %vm279_vm0, %v263_v50, 0.0  ;;  %v331_v54 = vsel %vm279_vm0, %v264_v51, 0.0  ;;  %v334_v61 = vsel %vm279_vm0, %v265_v58, 0.0  ;;  %v269_v5 = vmul.f32 %v1516_v0, %v234_v2 }
  0x23   : > { %284 = vadd.xlane.f32.xlu0 %v283_v16  ;;  %290 = vadd.xlane.f32.xlu1 %v289_v17  ;;  %v337_v62 = vsel %vm279_vm0, %v266_v59, 0.0  ;;  %v340_v63 = vsel %vm279_vm0, %v267_v60, 0.0  ;;  %v270_v6 = vmul.f32 %v1516_v0, %v235_v3  ;;  %v343_v7 = vsel %vm279_vm0, %v268_v4, 0.0 }
  0x24   : > { %296 = vadd.xlane.f32.xlu2 %v295_v18  ;;  %v346_v8 = vsel %vm279_vm0, %v269_v5, 0.0  ;;  %v271_v13 = vmul.f32 %v1516_v0, %v236_v10  ;;  %v272_v14 = vmul.f32 %v1516_v0, %v237_v11  ;;  %v273_v15 = vmul.f32 %v1516_v0, %v238_v12 }
  0x25   : > { %v349_v9 = vsel %vm279_vm0, %v270_v6, 0.0  ;;  %v274_v22 = vmul.f32 %v1516_v0, %v239_v19  ;;  %v275_v23 = vmul.f32 %v1516_v0, %v240_v20  ;;  %v276_v24 = vmul.f32 %v1516_v0, %v241_v21 }
  0x26   : > { %v352_v16 = vsel %vm279_vm0, %v271_v13, 0.0  ;;  %v355_v17 = vsel %vm279_vm0, %v272_v14, 0.0  ;;  %v358_v18 = vsel %vm279_vm0, %v273_v15, 0.0  ;;  %v277_v29 = vmul.f32 %v1516_v0, %v242_v28 }
  0x27   : > { %v278_v32 = vmul.f32 %v1516_v0, %v243_v31 }
  0x28   : > { %v370_v30 = vsel %vm279_vm0, %v277_v29, 0.0 }
  0x29   : > { %v373_v33 = vsel %vm279_vm0, %v278_v32, 0.0 }
  0x2b   : > { %299 = vadd.xlane.f32.xlu0 %v298_v25  ;;  %302 = vadd.xlane.f32.xlu1 %v301_v26  ;;  %v361_v25 = vsel %vm279_vm0, %v274_v22, 0.0  ;;  %v364_v26 = vsel %vm279_vm0, %v275_v23, 0.0 }
  0x2c   : > { %305 = vadd.xlane.f32.xlu2 %v304_v27  ;;  %v367_v27 = vsel %vm279_vm0, %v276_v24, 0.0  ;;  %vm1117_vm0 = vcmask 1048512  }
  0x33   : > { %308 = vadd.xlane.f32.xlu0 %v307_v34  ;;  %311 = vadd.xlane.f32.xlu1 %v310_v35  ;;  %v1440_v34 = vmov 0  }
  0x34   : > { %314 = vadd.xlane.f32.xlu2 %v313_v36  ;;  %1353 = vset.pattern.permute.xlu0 %v1440_v34 }
  0x35   : > { %1352 = vset.pattern.permute.xlu2 %v1440_v34  ;;  %1354 = vset.pattern.permute.xlu1 %v1440_v34 }
  0x3b   : > { %317 = vadd.xlane.f32.xlu0 %v316_v43  ;;  %320 = vadd.xlane.f32.xlu1 %v319_v44 }
  0x3c   : > { %323 = vadd.xlane.f32.xlu2 %v322_v45 }
  0x43   : > { %326 = vadd.xlane.f32.xlu0 %v325_v52  ;;  %329 = vadd.xlane.f32.xlu1 %v328_v53 }
  0x44   : > { %332 = vadd.xlane.f32.xlu2 %v331_v54 }
  0x4b   : > { %335 = vadd.xlane.f32.xlu0 %v334_v61  ;;  %338 = vadd.xlane.f32.xlu1 %v337_v62 }
  0x4c   : > { %341 = vadd.xlane.f32.xlu2 %v340_v63 }
  0x53   : > { %344 = vadd.xlane.f32.xlu0 %v343_v7  ;;  %347 = vadd.xlane.f32.xlu1 %v346_v8 }
  0x54   : > { %350 = vadd.xlane.f32.xlu2 %v349_v9 }
  0x5b   : > { %353 = vadd.xlane.f32.xlu0 %v352_v16  ;;  %356 = vadd.xlane.f32.xlu1 %v355_v17 }
  0x5c   : > { %359 = vadd.xlane.f32.xlu2 %v358_v18 }
  0x63   : > { %362 = vadd.xlane.f32.xlu0 %v361_v25  ;;  %365 = vadd.xlane.f32.xlu1 %v364_v26 }
  0x64   : > { %368 = vadd.xlane.f32.xlu2 %v367_v27 }
  0x6b   : > { %371 = vadd.xlane.f32.xlu0 %v370_v30  ;;  %374 = vadd.xlane.f32.xlu1 %v373_v33 }
  0x8e   : > { %v282_v35 = vpop.xlane.xlu0 %281  ;;  %v288_v53 = vpop.xlane.xlu1 %287 }
  0x8f   : > { %v409_v36 = vperm.slane %v282_v35, 0  ;;  %v410_v37 = vperm.slane %v282_v35, 1  ;;  %v411_v38 = vperm.slane %v282_v35, 2  ;;  %v412_v39 = vperm.slane %v282_v35, 3  ;;  %v294_v10 = vpop.xlane.xlu2 %293 }
  0x90   : > { %v413_v40 = vperm.slane %v282_v35, 4  ;;  %v414_v41 = vperm.slane %v282_v35, 5  ;;  %v415_v42 = vperm.slane %v282_v35, 6  ;;  %v416_v43 = vperm.slane %v282_v35, 7 }
  0x91   : > { %665 = vst [vmem:[#allocation1] ss:$9 sm:$0xff] %v409_v36  ;;  %v425_v54 = vperm.slane %v288_v53, 0  ;;  %v426_v55 = vperm.slane %v288_v53, 1  ;;  %v427_v56 = vperm.slane %v288_v53, 2  ;;  %v428_v58 = vperm.slane %v288_v53, 3 }
  0x92   : > { %667 = vst [vmem:[#allocation1 + $0x1] ss:$9 sm:$0xff] %v410_v37  ;;  %v429_v59 = vperm.slane %v288_v53, 4  ;;  %v430_v60 = vperm.slane %v288_v53, 5  ;;  %v431_v61 = vperm.slane %v288_v53, 6  ;;  %v432_v62 = vperm.slane %v288_v53, 7 }
  0x93   : > { %669 = vst [vmem:[#allocation1 + $0x2] ss:$9 sm:$0xff] %v411_v38  ;;  %v441_v11 = vperm.slane %v294_v10, 0  ;;  %v442_v12 = vperm.slane %v294_v10, 1  ;;  %v443_v13 = vperm.slane %v294_v10, 2  ;;  %v444_v14 = vperm.slane %v294_v10, 3 }
  0x94   : > { %671 = vst [vmem:[#allocation1 + $0x3] ss:$9 sm:$0xff] %v412_v39  ;;  %v445_v16 = vperm.slane %v294_v10, 4  ;;  %v446_v17 = vperm.slane %v294_v10, 5  ;;  %v447_v18 = vperm.slane %v294_v10, 6  ;;  %v448_v19 = vperm.slane %v294_v10, 7 }
  0x95   : > { %673 = vst [vmem:[#allocation1 + $0x4] ss:$9 sm:$0xff] %v413_v40 }
  0x96   : > { %675 = vst [vmem:[#allocation1 + $0x5] ss:$9 sm:$0xff] %v414_v41  ;;  %v285_v0 = vpop.xlane.xlu0 %284  ;;  %v291_v63 = vpop.xlane.xlu1 %290 }
  0x97   : > { %677 = vst [vmem:[#allocation1 + $0x6] ss:$9 sm:$0xff] %v415_v42  ;;  %v417_v44 = vperm.slane %v285_v0, 0  ;;  %v418_v45 = vperm.slane %v285_v0, 1  ;;  %v419_v46 = vperm.slane %v285_v0, 2  ;;  %v420_v48 = vperm.slane %v285_v0, 3  ;;  %v297_v20 = vpop.xlane.xlu2 %296 }
  0x98   : > { %679 = vst [vmem:[#allocation1 + $0x7] ss:$9 sm:$0xff] %v416_v43  ;;  %v421_v49 = vperm.slane %v285_v0, 4  ;;  %v422_v50 = vperm.slane %v285_v0, 5  ;;  %v423_v51 = vperm.slane %v285_v0, 6  ;;  %v424_v52 = vperm.slane %v285_v0, 7 }
  0x99   : > { %v433_v1 = vperm.slane %v291_v63, 0  ;;  %v434_v2 = vperm.slane %v291_v63, 1  ;;  %v435_v3 = vperm.slane %v291_v63, 2  ;;  %v436_v5 = vperm.slane %v291_v63, 3 }
  0x9a   : > { %v437_v6 = vperm.slane %v291_v63, 4  ;;  %v438_v7 = vperm.slane %v291_v63, 5  ;;  %v439_v8 = vperm.slane %v291_v63, 6  ;;  %v440_v9 = vperm.slane %v291_v63, 7 }
  0x9b   : > { %v449_v21 = vperm.slane %v297_v20, 0  ;;  %v450_v22 = vperm.slane %v297_v20, 1  ;;  %v451_v23 = vperm.slane %v297_v20, 2  ;;  %v452_v25 = vperm.slane %v297_v20, 3 }
  0x9c   : > { %v453_v26 = vperm.slane %v297_v20, 4  ;;  %v454_v27 = vperm.slane %v297_v20, 5  ;;  %v455_v28 = vperm.slane %v297_v20, 6  ;;  %v456_v29 = vperm.slane %v297_v20, 7 }
  0x9e   : > { %v300_v30 = vpop.xlane.xlu0 %299  ;;  %v303_v40 = vpop.xlane.xlu1 %302 }
  0x9f   : > { %v680_v47 = vld [vmem:[#allocation1] sm:$0xff]  ;;  %v457_v31 = vperm.slane %v300_v30, 0  ;;  %v458_v32 = vperm.slane %v300_v30, 1  ;;  %v459_v33 = vperm.slane %v300_v30, 2  ;;  %v460_v35 = vperm.slane %v300_v30, 3 }
  0xa0   : > { %681 = vst [vmem:[#allocation1] ss:$9 sm:$0xff] %v417_v44  ;;  %961 = vperm.xlu2 %1352, %v680_v47   ;;  %v461_v36 = vperm.slane %v300_v30, 4  ;;  %v462_v37 = vperm.slane %v300_v30, 5  ;;  %v463_v38 = vperm.slane %v300_v30, 6  ;;  %v464_v39 = vperm.slane %v300_v30, 7 }
  0xa1   : > { %682 = vst [vmem:[#allocation1 + $0x1] ss:$9 sm:$0xff] %v418_v45  ;;  %v465_v41 = vperm.slane %v303_v40, 0  ;;  %v466_v42 = vperm.slane %v303_v40, 1  ;;  %v467_v43 = vperm.slane %v303_v40, 2  ;;  %v468_v44 = vperm.slane %v303_v40, 3 }
  0xa2   : > { %683 = vst [vmem:[#allocation1 + $0x2] ss:$9 sm:$0xff] %v419_v46  ;;  %v469_v45 = vperm.slane %v303_v40, 4  ;;  %v470_v46 = vperm.slane %v303_v40, 5  ;;  %v471_v47 = vperm.slane %v303_v40, 6 }
  0xa3   : > { %684 = vst [vmem:[#allocation1 + $0x3] ss:$9 sm:$0xff] %v420_v48  ;;  %v472_v48 = vperm.slane %v303_v40, 7 }
  0xa4   : > { %685 = vst [vmem:[#allocation1 + $0x4] ss:$9 sm:$0xff] %v421_v49  ;;  %v306_v49 = vpop.xlane.xlu2 %305 }
  0xa5   : > { %686 = vst [vmem:[#allocation1 + $0x5] ss:$9 sm:$0xff] %v422_v50  ;;  %v473_v50 = vperm.slane %v306_v49, 0  ;;  %v476_v53 = vperm.slane %v306_v49, 3 }
  0xa6   : > { %687 = vst [vmem:[#allocation1 + $0x6] ss:$9 sm:$0xff] %v423_v51  ;;  %v474_v51 = vperm.slane %v306_v49, 1 }
  0xa7   : > { %688 = vst [vmem:[#allocation1 + $0x7] ss:$9 sm:$0xff] %v424_v52  ;;  %v475_v52 = vperm.slane %v306_v49, 2 }
  0xae   : > { %v689_v57 = vld [vmem:[#allocation1] sm:$0xff] }
  0xaf   : > { %690 = vst [vmem:[#allocation1] ss:$9 sm:$0xff] %v425_v54  ;;  %964 = vperm.xlu0 %1353, %v689_v57   ;;  %v479_v57 = vperm.slane %v306_v49, 6 }
  0xb0   : > { %691 = vst [vmem:[#allocation1 + $0x1] ss:$9 sm:$0xff] %v426_v55  ;;  %v477_v55 = vperm.slane %v306_v49, 4 }
  0xb1   : > { %692 = vst [vmem:[#allocation1 + $0x2] ss:$9 sm:$0xff] %v427_v56  ;;  %v478_v56 = vperm.slane %v306_v49, 5 }
  0xb2   : > { %693 = vst [vmem:[#allocation1 + $0x3] ss:$9 sm:$0xff] %v428_v58  ;;  %v480_v58 = vperm.slane %v306_v49, 7 }
  0xb3   : > { %694 = vst [vmem:[#allocation1 + $0x4] ss:$9 sm:$0xff] %v429_v59  ;;  %v309_v59 = vpop.xlane.xlu0 %308 }
  0xb4   : > { %695 = vst [vmem:[#allocation1 + $0x5] ss:$9 sm:$0xff] %v430_v60  ;;  %v481_v60 = vperm.slane %v309_v59, 0 }
  0xb5   : > { %696 = vst [vmem:[#allocation1 + $0x6] ss:$9 sm:$0xff] %v431_v61  ;;  %v482_v61 = vperm.slane %v309_v59, 1 }
  0xb6   : > { %697 = vst [vmem:[#allocation1 + $0x7] ss:$9 sm:$0xff] %v432_v62  ;;  %v483_v62 = vperm.slane %v309_v59, 2 }
  0xbd   : > { %v698_v4 = vld [vmem:[#allocation1] sm:$0xff] }
  0xbe   : > { %699 = vst [vmem:[#allocation1] ss:$9 sm:$0xff] %v433_v1  ;;  %967 = vperm.xlu1 %1354, %v698_v4   ;;  %v484_v1 = vperm.slane %v309_v59, 3  ;;  %v487_v4 = vperm.slane %v309_v59, 6 }
  0xbf   : > { %700 = vst [vmem:[#allocation1 + $0x1] ss:$9 sm:$0xff] %v434_v2  ;;  %v485_v2 = vperm.slane %v309_v59, 4 }
  0xc0   : > { %701 = vst [vmem:[#allocation1 + $0x2] ss:$9 sm:$0xff] %v435_v3  ;;  %v486_v3 = vperm.slane %v309_v59, 5 }
  0xc1   : > { %702 = vst [vmem:[#allocation1 + $0x3] ss:$9 sm:$0xff] %v436_v5  ;;  %v488_v5 = vperm.slane %v309_v59, 7 }
  0xc2   : > { %703 = vst [vmem:[#allocation1 + $0x4] ss:$9 sm:$0xff] %v437_v6  ;;  %v312_v6 = vpop.xlane.xlu1 %311 }
  0xc3   : > { %704 = vst [vmem:[#allocation1 + $0x5] ss:$9 sm:$0xff] %v438_v7  ;;  %v489_v7 = vperm.slane %v312_v6, 0 }
  0xc4   : > { %705 = vst [vmem:[#allocation1 + $0x6] ss:$9 sm:$0xff] %v439_v8  ;;  %v490_v8 = vperm.slane %v312_v6, 1 }
  0xc5   : > { %706 = vst [vmem:[#allocation1 + $0x7] ss:$9 sm:$0xff] %v440_v9  ;;  %v491_v9 = vperm.slane %v312_v6, 2 }
  0xcc   : > { %v707_v15 = vld [vmem:[#allocation1] sm:$0xff] }
  0xcd   : > { %708 = vst [vmem:[#allocation1] ss:$9 sm:$0xff] %v441_v11  ;;  %970 = vperm.xlu2 %1352, %v707_v15   ;;  %v492_v11 = vperm.slane %v312_v6, 3  ;;  %v496_v15 = vperm.slane %v312_v6, 7 }
  0xce   : > { %709 = vst [vmem:[#allocation1 + $0x1] ss:$9 sm:$0xff] %v442_v12  ;;  %v493_v12 = vperm.slane %v312_v6, 4 }
  0xcf   : > { %710 = vst [vmem:[#allocation1 + $0x2] ss:$9 sm:$0xff] %v443_v13  ;;  %v494_v13 = vperm.slane %v312_v6, 5 }
  0xd0   : > { %711 = vst [vmem:[#allocation1 + $0x3] ss:$9 sm:$0xff] %v444_v14  ;;  %v495_v14 = vperm.slane %v312_v6, 6 }
  0xd1   : > { %712 = vst [vmem:[#allocation1 + $0x4] ss:$9 sm:$0xff] %v445_v16  ;;  %v315_v16 = vpop.xlane.xlu2 %314 }
  0xd2   : > { %713 = vst [vmem:[#allocation1 + $0x5] ss:$9 sm:$0xff] %v446_v17  ;;  %v497_v17 = vperm.slane %v315_v16, 0  ;;  %v500_v20 = vperm.slane %v315_v16, 3 }
  0xd3   : > { %714 = vst [vmem:[#allocation1 + $0x6] ss:$9 sm:$0xff] %v447_v18  ;;  %v498_v18 = vperm.slane %v315_v16, 1 }
  0xd4   : > { %715 = vst [vmem:[#allocation1 + $0x7] ss:$9 sm:$0xff] %v448_v19  ;;  %v499_v19 = vperm.slane %v315_v16, 2 }
  0xdb   : > { %v716_v24 = vld [vmem:[#allocation1] sm:$0xff] }
  0xdc   : > { %717 = vst [vmem:[#allocation1] ss:$9 sm:$0xff] %v449_v21  ;;  %973 = vperm.xlu2 %1352, %v716_v24   ;;  %v503_v24 = vperm.slane %v315_v16, 6 }
  0xdd   : > { %718 = vst [vmem:[#allocation1 + $0x1] ss:$9 sm:$0xff] %v450_v22  ;;  %v501_v22 = vperm.slane %v315_v16, 4 }
  0xde   : > { %719 = vst [vmem:[#allocation1 + $0x2] ss:$9 sm:$0xff] %v451_v23  ;;  %v502_v23 = vperm.slane %v315_v16, 5 }
  0xdf   : > { %720 = vst [vmem:[#allocation1 + $0x3] ss:$9 sm:$0xff] %v452_v25  ;;  %v504_v25 = vperm.slane %v315_v16, 7 }
  0xe0   : > { %721 = vst [vmem:[#allocation1 + $0x4] ss:$9 sm:$0xff] %v453_v26  ;;  %v318_v26 = vpop.xlane.xlu0 %317 }
  0xe1   : > { %722 = vst [vmem:[#allocation1 + $0x5] ss:$9 sm:$0xff] %v454_v27  ;;  %v505_v27 = vperm.slane %v318_v26, 0 }
  0xe2   : > { %723 = vst [vmem:[#allocation1 + $0x6] ss:$9 sm:$0xff] %v455_v28  ;;  %v506_v28 = vperm.slane %v318_v26, 1 }
  0xe3   : > { %724 = vst [vmem:[#allocation1 + $0x7] ss:$9 sm:$0xff] %v456_v29  ;;  %v507_v29 = vperm.slane %v318_v26, 2 }
  0xea   : > { %v725_v34 = vld [vmem:[#allocation1] sm:$0xff] }
  0xeb   : > { %726 = vst [vmem:[#allocation1] ss:$9 sm:$0xff] %v457_v31  ;;  %976 = vperm.xlu1 %1354, %v725_v34   ;;  %v508_v31 = vperm.slane %v318_v26, 3  ;;  %v511_v34 = vperm.slane %v318_v26, 6 }
  0xec   : > { %727 = vst [vmem:[#allocation1 + $0x1] ss:$9 sm:$0xff] %v458_v32  ;;  %v509_v32 = vperm.slane %v318_v26, 4 }
  0xed   : > { %728 = vst [vmem:[#allocation1 + $0x2] ss:$9 sm:$0xff] %v459_v33  ;;  %v510_v33 = vperm.slane %v318_v26, 5 }
  0xee   : > { %729 = vst [vmem:[#allocation1 + $0x3] ss:$9 sm:$0xff] %v460_v35  ;;  %v512_v35 = vperm.slane %v318_v26, 7 }
  0xef   : > { %730 = vst [vmem:[#allocation1 + $0x4] ss:$9 sm:$0xff] %v461_v36  ;;  %v321_v36 = vpop.xlane.xlu1 %320 }
  0xf0   : > { %731 = vst [vmem:[#allocation1 + $0x5] ss:$9 sm:$0xff] %v462_v37  ;;  %v513_v37 = vperm.slane %v321_v36, 0 }
  0xf1   : > { %732 = vst [vmem:[#allocation1 + $0x6] ss:$9 sm:$0xff] %v463_v38  ;;  %v514_v38 = vperm.slane %v321_v36, 1 }
  0xf2   : > { %733 = vst [vmem:[#allocation1 + $0x7] ss:$9 sm:$0xff] %v464_v39  ;;  %v515_v39 = vperm.slane %v321_v36, 2 }
  0xf9   : > { %v734_v0 = vld [vmem:[#allocation1] sm:$0xff] }
  0xfa   : > { %735 = vst [vmem:[#allocation1] ss:$9 sm:$0xff] %v465_v41  ;;  %979 = vperm.xlu2 %1352, %v734_v0   ;;  %v516_v41 = vperm.slane %v321_v36, 3  ;;  %v519_v0 = vperm.slane %v321_v36, 6 }
  0xfb   : > { %736 = vst [vmem:[#allocation1 + $0x1] ss:$9 sm:$0xff] %v466_v42  ;;  %v517_v42 = vperm.slane %v321_v36, 4 }
  0xfc   : > { %737 = vst [vmem:[#allocation1 + $0x2] ss:$9 sm:$0xff] %v467_v43  ;;  %v518_v43 = vperm.slane %v321_v36, 5 }
  0xfd   : > { %738 = vst [vmem:[#allocation1 + $0x3] ss:$9 sm:$0xff] %v468_v44  ;;  %v520_v44 = vperm.slane %v321_v36, 7 }
  0xfe   : > { %739 = vst [vmem:[#allocation1 + $0x4] ss:$9 sm:$0xff] %v469_v45  ;;  %v324_v45 = vpop.xlane.xlu2 %323 }
  0xff   : > { %740 = vst [vmem:[#allocation1 + $0x5] ss:$9 sm:$0xff] %v470_v46  ;;  %v521_v46 = vperm.slane %v324_v45, 0  ;;  %v524_v49 = vperm.slane %v324_v45, 3 }
 0x100   : > { %741 = vst [vmem:[#allocation1 + $0x6] ss:$9 sm:$0xff] %v471_v47  ;;  %v522_v47 = vperm.slane %v324_v45, 1 }
 0x101   : > { %742 = vst [vmem:[#allocation1 + $0x7] ss:$9 sm:$0xff] %v472_v48  ;;  %v523_v48 = vperm.slane %v324_v45, 2 }
 0x108   : > { %v743_v54 = vld [vmem:[#allocation1] sm:$0xff] }
 0x109   : > { %744 = vst [vmem:[#allocation1] ss:$9 sm:$0xff] %v473_v50  ;;  %982 = vperm.xlu1 %1354, %v743_v54   ;;  %v528_v54 = vperm.slane %v324_v45, 7 }
 0x10a   : > { %745 = vst [vmem:[#allocation1 + $0x1] ss:$9 sm:$0xff] %v474_v51  ;;  %v525_v51 = vperm.slane %v324_v45, 4 }
 0x10b   : > { %746 = vst [vmem:[#allocation1 + $0x2] ss:$9 sm:$0xff] %v475_v52  ;;  %v526_v52 = vperm.slane %v324_v45, 5 }
 0x10c   : > { %747 = vst [vmem:[#allocation1 + $0x3] ss:$9 sm:$0xff] %v476_v53  ;;  %v527_v53 = vperm.slane %v324_v45, 6 }
 0x10d   : > { %748 = vst [vmem:[#allocation1 + $0x4] ss:$9 sm:$0xff] %v477_v55  ;;  %v327_v55 = vpop.xlane.xlu0 %326 }
 0x10e   : > { %749 = vst [vmem:[#allocation1 + $0x5] ss:$9 sm:$0xff] %v478_v56  ;;  %v529_v56 = vperm.slane %v327_v55, 0 }
 0x10f   : > { %750 = vst [vmem:[#allocation1 + $0x6] ss:$9 sm:$0xff] %v479_v57  ;;  %v530_v57 = vperm.slane %v327_v55, 1 }
 0x110   : > { %751 = vst [vmem:[#allocation1 + $0x7] ss:$9 sm:$0xff] %v480_v58  ;;  %v531_v58 = vperm.slane %v327_v55, 2 }
 0x117   : > { %v752_v63 = vld [vmem:[#allocation1] sm:$0xff] }
 0x118   : > { %753 = vst [vmem:[#allocation1] ss:$9 sm:$0xff] %v481_v60  ;;  %985 = vperm.xlu0 %1353, %v752_v63   ;;  %v532_v60 = vperm.slane %v327_v55, 3  ;;  %v535_v63 = vperm.slane %v327_v55, 6 }
 0x119   : > { %754 = vst [vmem:[#allocation1 + $0x1] ss:$9 sm:$0xff] %v482_v61  ;;  %v533_v61 = vperm.slane %v327_v55, 4 }
 0x11a   : > { %755 = vst [vmem:[#allocation1 + $0x2] ss:$9 sm:$0xff] %v483_v62  ;;  %v534_v62 = vperm.slane %v327_v55, 5 }
 0x11b   : > { %756 = vst [vmem:[#allocation1 + $0x3] ss:$9 sm:$0xff] %v484_v1  ;;  %v536_v1 = vperm.slane %v327_v55, 7 }
 0x11c   : > { %757 = vst [vmem:[#allocation1 + $0x4] ss:$9 sm:$0xff] %v485_v2  ;;  %v333_v2 = vpop.xlane.xlu2 %332 }
 0x11d   : > { %758 = vst [vmem:[#allocation1 + $0x5] ss:$9 sm:$0xff] %v486_v3  ;;  %v330_v3 = vpop.xlane.xlu1 %329  ;;  %v552_v26 = vperm.slane %v333_v2, 7 }
 0x11e   : > { %759 = vst [vmem:[#allocation1 + $0x6] ss:$9 sm:$0xff] %v487_v4  ;;  %v537_v4 = vperm.slane %v330_v3, 0  ;;  %v539_v6 = vperm.slane %v330_v3, 2 }
 0x11f   : > { %760 = vst [vmem:[#allocation1 + $0x7] ss:$9 sm:$0xff] %v488_v5  ;;  %v538_v5 = vperm.slane %v330_v3, 1 }
 0x125   : > { %v1623_v16 = vpop.xlane.xlu1 %338 }
 0x126   : > { %v761_v10 = vld [vmem:[#allocation1] sm:$0xff]  ;;  %v568_v55 = vperm.slane %v1623_v16, 7 }
 0x127   : > { %762 = vst [vmem:[#allocation1] ss:$9 sm:$0xff] %v489_v7  ;;  %988 = vperm.xlu2 %1352, %v761_v10   ;;  %v1619_v7 = vpop.xlane.xlu2 %341  ;;  %v541_v10 = vperm.slane %v330_v3, 4 }
 0x128   : > { %763 = vst [vmem:[#allocation1 + $0x1] ss:$9 sm:$0xff] %v490_v8 }
 0x129   : > { %764 = vst [vmem:[#allocation1 + $0x2] ss:$9 sm:$0xff] %v491_v9  ;;  %v540_v9 = vperm.slane %v330_v3, 3 }
 0x12a   : > { %765 = vst [vmem:[#allocation1 + $0x3] ss:$9 sm:$0xff] %v492_v11  ;;  %v542_v11 = vperm.slane %v330_v3, 5 }
 0x12b   : > { %766 = vst [vmem:[#allocation1 + $0x4] ss:$9 sm:$0xff] %v493_v12  ;;  %v543_v12 = vperm.slane %v330_v3, 6 }
 0x12c   : > { %767 = vst [vmem:[#allocation1 + $0x5] ss:$9 sm:$0xff] %v494_v13  ;;  %v336_v13 = vpop.xlane.xlu0 %335 }
 0x12d   : > { %768 = vst [vmem:[#allocation1 + $0x6] ss:$9 sm:$0xff] %v495_v14  ;;  %v544_v14 = vperm.slane %v330_v3, 7 }
 0x12e   : > { %769 = vst [vmem:[#allocation1 + $0x7] ss:$9 sm:$0xff] %v496_v15 }
 0x12f   : > { %v1621_v15 = vpop.xlane.xlu2 %350 }
 0x135   : > { %v770_v21 = vld [vmem:[#allocation1] sm:$0xff] }
 0x136   : > { %771 = vst [vmem:[#allocation1] ss:$9 sm:$0xff] %v497_v17  ;;  %991 = vperm.xlu1 %1354, %v770_v21   ;;  %v545_v17 = vperm.slane %v333_v2, 0  ;;  %v548_v21 = vperm.slane %v333_v2, 3 }
 0x137   : > { %772 = vst [vmem:[#allocation1 + $0x1] ss:$9 sm:$0xff] %v498_v18  ;;  %v546_v18 = vperm.slane %v333_v2, 1 }
 0x138   : > { %773 = vst [vmem:[#allocation1 + $0x2] ss:$9 sm:$0xff] %v499_v19  ;;  %v1625_v19 = vpop.xlane.xlu0 %344 }
 0x139   : > { %774 = vst [vmem:[#allocation1 + $0x3] ss:$9 sm:$0xff] %v500_v20  ;;  %v547_v20 = vperm.slane %v333_v2, 2 }
 0x13a   : > { %775 = vst [vmem:[#allocation1 + $0x4] ss:$9 sm:$0xff] %v501_v22 }
 0x13b   : > { %776 = vst [vmem:[#allocation1 + $0x5] ss:$9 sm:$0xff] %v502_v23  ;;  %v549_v23 = vperm.slane %v333_v2, 4 }
 0x13c   : > { %777 = vst [vmem:[#allocation1 + $0x6] ss:$9 sm:$0xff] %v503_v24  ;;  %v550_v24 = vperm.slane %v333_v2, 5 }
 0x13d   : > { %778 = vst [vmem:[#allocation1 + $0x7] ss:$9 sm:$0xff] %v504_v25  ;;  %v551_v25 = vperm.slane %v333_v2, 6  ;;  %v570_v2 = vperm.slane %v1619_v7, 1 }
 0x144   : > { %v779_v30 = vld [vmem:[#allocation1] sm:$0xff] }
 0x145   : > { %780 = vst [vmem:[#allocation1] ss:$9 sm:$0xff] %v505_v27  ;;  %994 = vperm.xlu0 %1353, %v779_v30   ;;  %v1627_v27 = vpop.xlane.xlu2 %359  ;;  %v553_v30 = vperm.slane %v336_v13, 0 }
 0x146   : > { %781 = vst [vmem:[#allocation1 + $0x1] ss:$9 sm:$0xff] %v506_v28  ;;  %v1629_v28 = vpop.xlane.xlu1 %347 }
 0x147   : > { %782 = vst [vmem:[#allocation1 + $0x2] ss:$9 sm:$0xff] %v507_v29  ;;  %v1631_v29 = vpop.xlane.xlu0 %353 }
 0x148   : > { %783 = vst [vmem:[#allocation1 + $0x3] ss:$9 sm:$0xff] %v508_v31  ;;  %v554_v31 = vperm.slane %v336_v13, 1 }
 0x149   : > { %784 = vst [vmem:[#allocation1 + $0x4] ss:$9 sm:$0xff] %v509_v32  ;;  %v555_v32 = vperm.slane %v336_v13, 2 }
 0x14a   : > { %785 = vst [vmem:[#allocation1 + $0x5] ss:$9 sm:$0xff] %v510_v33 }
 0x14b   : > { %786 = vst [vmem:[#allocation1 + $0x6] ss:$9 sm:$0xff] %v511_v34 }
 0x14c   : > { %787 = vst [vmem:[#allocation1 + $0x7] ss:$9 sm:$0xff] %v512_v35  ;;  %v556_v35 = vperm.slane %v336_v13, 3 }
 0x14d   : > { %v1633_v33 = vpop.xlane.xlu2 %368 }
 0x14e   : > { %v1635_v36 = vpop.xlane.xlu1 %356 }
 0x153   : > { %v788_v40 = vld [vmem:[#allocation1] sm:$0xff] }
 0x154   : > { %789 = vst [vmem:[#allocation1] ss:$9 sm:$0xff] %v513_v37  ;;  %997 = vperm.xlu2 %1352, %v788_v40   ;;  %v557_v37 = vperm.slane %v336_v13, 4  ;;  %v1637_v40 = vpop.xlane.xlu0 %362 }
 0x155   : > { %790 = vst [vmem:[#allocation1 + $0x1] ss:$9 sm:$0xff] %v514_v38  ;;  %v558_v38 = vperm.slane %v336_v13, 5 }
 0x156   : > { %791 = vst [vmem:[#allocation1 + $0x2] ss:$9 sm:$0xff] %v515_v39  ;;  %v559_v39 = vperm.slane %v336_v13, 6 }
 0x157   : > { %792 = vst [vmem:[#allocation1 + $0x3] ss:$9 sm:$0xff] %v516_v41  ;;  %v560_v41 = vperm.slane %v336_v13, 7 }
 0x158   : > { %793 = vst [vmem:[#allocation1 + $0x4] ss:$9 sm:$0xff] %v517_v42  ;;  %v962_v42 = vpop.permute.xlu2 %961 }
 0x159   : > { %794 = vst [vmem:[#allocation1 + $0x5] ss:$9 sm:$0xff] %v518_v43  ;;  %v1639_v43 = vpop.xlane.xlu1 %365 }
 0x15a   : > { %795 = vst [vmem:[#allocation1 + $0x6] ss:$9 sm:$0xff] %v519_v0  ;;  %v561_v0 = vperm.slane %v1623_v16, 0 }
 0x15b   : > { %796 = vst [vmem:[#allocation1 + $0x7] ss:$9 sm:$0xff] %v520_v44  ;;  %v562_v44 = vperm.slane %v1623_v16, 1 }
 0x15c   : > { %v1643_v45 = vpop.xlane.xlu0 %371 }
 0x162   : > { %v797_v50 = vld [vmem:[#allocation1] sm:$0xff] }
 0x163   : > { %798 = vst [vmem:[#allocation1] ss:$9 sm:$0xff] %v521_v46  ;;  %1000 = vperm.xlu1 %1354, %v797_v50   ;;  %v563_v46 = vperm.slane %v1623_v16, 2  ;;  %v206_v50 = vlaneseq }
 0x164   : > { %799 = vst [vmem:[#allocation1 + $0x1] ss:$9 sm:$0xff] %v522_v47 }
 0x165   : > { %800 = vst [vmem:[#allocation1 + $0x2] ss:$9 sm:$0xff] %v523_v48  ;;  %v564_v48 = vperm.slane %v1623_v16, 3  ;;  %vm1795_vm6 = vcmp.lt.s32.totalorder %v206_v50, 256 }
 0x166   : > { %801 = vst [vmem:[#allocation1 + $0x3] ss:$9 sm:$0xff] %v524_v49  ;;  %v565_v49 = vperm.slane %v1623_v16, 4 }
 0x167   : > { %802 = vst [vmem:[#allocation1 + $0x4] ss:$9 sm:$0xff] %v525_v51  ;;  %v566_v51 = vperm.slane %v1623_v16, 5 }
 0x168   : > { %803 = vst [vmem:[#allocation1 + $0x5] ss:$9 sm:$0xff] %v526_v52  ;;  %v567_v52 = vperm.slane %v1623_v16, 6  ;;  %v574_v16 = vperm.slane %v1619_v7, 5 }
 0x169   : > { %804 = vst [vmem:[#allocation1 + $0x6] ss:$9 sm:$0xff] %v527_v53  ;;  %v971_v53 = vpop.permute.xlu2 %970 }
 0x16a   : > { %805 = vst [vmem:[#allocation1 + $0x7] ss:$9 sm:$0xff] %v528_v54  ;;  %v1650_v54 = vpop.xlane.xlu1 %374 }
 0x171   : > { %v806_v59 = vld [vmem:[#allocation1] sm:$0xff] }
 0x172   : > { %807 = vst [vmem:[#allocation1] ss:$9 sm:$0xff] %v529_v56  ;;  %1003 = vperm.xlu0 %1353, %v806_v59   ;;  %v1654_v56 = vand.u32 127, %v206_v50 }
 0x173   : > { %808 = vst [vmem:[#allocation1 + $0x1] ss:$9 sm:$0xff] %v530_v57 }
 0x174   : > { %809 = vst [vmem:[#allocation1 + $0x2] ss:$9 sm:$0xff] %v531_v58  ;;  %v1657_v57 = vadd.s32 4294967288, %v1654_v56  ;;  %v965_v58 = vpop.permute.xlu0 %964  ;;  %v1660_v59 = vadd.s32 4294967280, %v1654_v56  ;;  %v1058_v3 = vperm.slane %v962_v42, %v1654_v56 }
 0x175   : > { %810 = vst [vmem:[#allocation1 + $0x3] ss:$9 sm:$0xff] %v532_v60  ;;  %v1663_v60 = vadd.s32 4294967272, %v1654_v56 }
 0x176   : > { %811 = vst [vmem:[#allocation1 + $0x4] ss:$9 sm:$0xff] %v533_v61  ;;  %v1060_v61 = vperm.slane %v965_v58, %v1657_v57  ;;  %v597_v58 = vperm.slane %v1621_v15, 4 }
 0x177   : > { %812 = vst [vmem:[#allocation1 + $0x5] ss:$9 sm:$0xff] %v534_v62  ;;  %v968_v62 = vpop.permute.xlu1 %967 }
 0x178   : > { %813 = vst [vmem:[#allocation1 + $0x6] ss:$9 sm:$0xff] %v535_v63  ;;  %v569_v63 = vperm.slane %v1619_v7, 0 }
 0x179   : > { %814 = vst [vmem:[#allocation1 + $0x7] ss:$9 sm:$0xff] %v536_v1  ;;  %v1668_v1 = vadd.s32 4294967264, %v1654_v56 }
 0x180   : > { %v815_v8 = vld [vmem:[#allocation1] sm:$0xff] }
 0x181   : > { %816 = vst [vmem:[#allocation1] ss:$9 sm:$0xff] %v537_v4  ;;  %1006 = vperm.xlu2 %1352, %v815_v8   ;;  %v974_v4 = vpop.permute.xlu2 %973  ;;  %v572_v8 = vperm.slane %v1619_v7, 3 }
 0x182   : > { %817 = vst [vmem:[#allocation1 + $0x1] ss:$9 sm:$0xff] %v538_v5  ;;  %v571_v5 = vperm.slane %v1619_v7, 2  ;;  %v1072_v13 = vperm.slane %v974_v4, %v1668_v1 }
 0x183   : > { %818 = vst [vmem:[#allocation1 + $0x2] ss:$9 sm:$0xff] %v539_v6  ;;  %v1064_v6 = vperm.slane %v968_v62, %v1660_v59  ;;  %v600_v62 = vperm.slane %v1621_v15, 7 }
 0x184   : > { %819 = vst [vmem:[#allocation1 + $0x3] ss:$9 sm:$0xff] %v540_v9 }
 0x185   : > { %820 = vst [vmem:[#allocation1 + $0x4] ss:$9 sm:$0xff] %v541_v10  ;;  %v1068_v10 = vperm.slane %v971_v53, %v1663_v60  ;;  %v596_v53 = vperm.slane %v1621_v15, 3 }
 0x186   : > { %821 = vst [vmem:[#allocation1 + $0x5] ss:$9 sm:$0xff] %v542_v11  ;;  %v1062_v11 = vsel %vm1061_vm1, %v1060_v61, %v1058_v3  ;;  %v599_v61 = vperm.slane %v1621_v15, 6  ;;  %v603_v3 = vperm.slane %v1631_v29, 2 }
 0x187   : > { %822 = vst [vmem:[#allocation1 + $0x6] ss:$9 sm:$0xff] %v543_v12  ;;  %v573_v12 = vperm.slane %v1619_v7, 4 }
 0x188   : > { %823 = vst [vmem:[#allocation1 + $0x7] ss:$9 sm:$0xff] %v544_v14  ;;  %v1066_v14 = vsel %vm1065_vm2, %v1064_v6, %v1062_v11  ;;  %v605_v6 = vperm.slane %v1631_v29, 4  ;;  %v610_v11 = vperm.slane %v1635_v36, 1 }
 0x18f   : > { %v824_v22 = vld [vmem:[#allocation1] sm:$0xff] }
 0x190   : > { %825 = vst [vmem:[#allocation1] ss:$9 sm:$0xff] %v545_v17  ;;  %1009 = vperm.xlu1 %1354, %v824_v22   ;;  %v1070_v17 = vsel %vm1069_vm3, %v1068_v10, %v1066_v14  ;;  %v577_v22 = vperm.slane %v1625_v19, 0  ;;  %v609_v10 = vperm.slane %v1635_v36, 0  ;;  %v612_v14 = vperm.slane %v1635_v36, 3 }
 0x191   : > { %826 = vst [vmem:[#allocation1 + $0x1] ss:$9 sm:$0xff] %v546_v18  ;;  %v575_v18 = vperm.slane %v1619_v7, 6 }
 0x192   : > { %827 = vst [vmem:[#allocation1 + $0x2] ss:$9 sm:$0xff] %v547_v20  ;;  %v1074_v20 = vsel %vm1073_vm4, %v1072_v13, %v1070_v17  ;;  %v615_v17 = vperm.slane %v1635_v36, 6 }
 0x193   : > { %828 = vst [vmem:[#allocation1 + $0x3] ss:$9 sm:$0xff] %v548_v21  ;;  %v576_v21 = vperm.slane %v1619_v7, 7  ;;  %v582_v7 = vperm.slane %v1625_v19, 5 }
 0x194   : > { %829 = vst [vmem:[#allocation1 + $0x4] ss:$9 sm:$0xff] %v549_v23  ;;  %v578_v23 = vperm.slane %v1625_v19, 1 }
 0x195   : > { %830 = vst [vmem:[#allocation1 + $0x5] ss:$9 sm:$0xff] %v550_v24  ;;  %v579_v24 = vperm.slane %v1625_v19, 2 }
 0x196   : > { %831 = vst [vmem:[#allocation1 + $0x6] ss:$9 sm:$0xff] %v551_v25 }
 0x197   : > { %832 = vst [vmem:[#allocation1 + $0x7] ss:$9 sm:$0xff] %v552_v26  ;;  %v580_v26 = vperm.slane %v1625_v19, 3 }
 0x19e   : > { %v833_v34 = vld [vmem:[#allocation1] sm:$0xff] }
 0x19f   : > { %834 = vst [vmem:[#allocation1] ss:$9 sm:$0xff] %v553_v30  ;;  %1012 = vperm.xlu0 %1353, %v833_v34   ;;  %v581_v30 = vperm.slane %v1625_v19, 4  ;;  %v1694_v34 = vadd.s32 4294967256, %v1654_v56 }
 0x1a0   : > { %835 = vst [vmem:[#allocation1 + $0x1] ss:$9 sm:$0xff] %v554_v31  ;;  %v583_v31 = vperm.slane %v1625_v19, 6 }
 0x1a1   : > { %836 = vst [vmem:[#allocation1 + $0x2] ss:$9 sm:$0xff] %v555_v32  ;;  %v584_v32 = vperm.slane %v1625_v19, 7  ;;  %v587_v19 = vperm.slane %v1629_v28, 2 }
 0x1a2   : > { %837 = vst [vmem:[#allocation1 + $0x3] ss:$9 sm:$0xff] %v556_v35  ;;  %v977_v35 = vpop.permute.xlu1 %976 }
 0x1a3   : > { %838 = vst [vmem:[#allocation1 + $0x4] ss:$9 sm:$0xff] %v557_v37  ;;  %v1076_v37 = vperm.slane %v977_v35, %v1694_v34  ;;  %v628_v35 = vperm.slane %v1637_v40, 3 }
 0x1a4   : > { %839 = vst [vmem:[#allocation1 + $0x5] ss:$9 sm:$0xff] %v558_v38 }
 0x1a5   : > { %840 = vst [vmem:[#allocation1 + $0x6] ss:$9 sm:$0xff] %v559_v39  ;;  %v1698_v38 = vsel %vm1077_vm5, %v1076_v37, %v1074_v20  ;;  %v585_v39 = vperm.slane %v1629_v28, 0  ;;  %v617_v20 = vperm.slane %v1627_v27, 0 }
 0x1a6   : > { %841 = vst [vmem:[#allocation1 + $0x7] ss:$9 sm:$0xff] %v560_v41  ;;  %v586_v41 = vperm.slane %v1629_v28, 1 }
 0x1ad   : > { %v842_v47 = vld [vmem:[#allocation1] sm:$0xff] }
 0x1ae   : > { %843 = vst [vmem:[#allocation1] ss:$9 sm:$0xff] %v561_v0  ;;  %1015 = vperm.xlu2 %1352, %v842_v47   ;;  %v588_v0 = vperm.slane %v1629_v28, 3  ;;  %v591_v47 = vperm.slane %v1629_v28, 6 }
 0x1af   : > { %844 = vst [vmem:[#allocation1 + $0x1] ss:$9 sm:$0xff] %v562_v44  ;;  %v589_v44 = vperm.slane %v1629_v28, 4 }
 0x1b0   : > { %845 = vst [vmem:[#allocation1 + $0x2] ss:$9 sm:$0xff] %v563_v46  ;;  %v590_v46 = vperm.slane %v1629_v28, 5 }
 0x1b1   : > { %846 = vst [vmem:[#allocation1 + $0x3] ss:$9 sm:$0xff] %v564_v48  ;;  %v592_v48 = vperm.slane %v1629_v28, 7  ;;  %v598_v28 = vperm.slane %v1621_v15, 5 }
 0x1b2   : > { %847 = vst [vmem:[#allocation1 + $0x4] ss:$9 sm:$0xff] %v565_v49  ;;  %v593_v49 = vperm.slane %v1621_v15, 0 }
 0x1b3   : > { %848 = vst [vmem:[#allocation1 + $0x5] ss:$9 sm:$0xff] %v566_v51  ;;  %v594_v51 = vperm.slane %v1621_v15, 1 }
 0x1b4   : > { %849 = vst [vmem:[#allocation1 + $0x6] ss:$9 sm:$0xff] %v567_v52  ;;  %v595_v52 = vperm.slane %v1621_v15, 2  ;;  %v606_v15 = vperm.slane %v1631_v29, 5 }
 0x1b5   : > { %850 = vst [vmem:[#allocation1 + $0x7] ss:$9 sm:$0xff] %v568_v55 }
 0x1bc   : > { %v851_v9 = vld [vmem:[#allocation1] sm:$0xff] }
 0x1bd   : > { %852 = vst [vmem:[#allocation1] ss:$9 sm:$0xff] %v569_v63  ;;  %1018 = vperm.xlu1 %1354, %v851_v9   ;;  %v601_v63 = vperm.slane %v1631_v29, 0  ;;  %v608_v9 = vperm.slane %v1631_v29, 7 }
 0x1be   : > { %853 = vst [vmem:[#allocation1 + $0x1] ss:$9 sm:$0xff] %v570_v2  ;;  %v602_v2 = vperm.slane %v1631_v29, 1 }
 0x1bf   : > { %854 = vst [vmem:[#allocation1 + $0x2] ss:$9 sm:$0xff] %v571_v5  ;;  %v604_v5 = vperm.slane %v1631_v29, 3 }
 0x1c0   : > { %855 = vst [vmem:[#allocation1 + $0x3] ss:$9 sm:$0xff] %v572_v8  ;;  %v607_v8 = vperm.slane %v1631_v29, 6  ;;  %v614_v29 = vperm.slane %v1635_v36, 5 }
 0x1c1   : > { %856 = vst [vmem:[#allocation1 + $0x4] ss:$9 sm:$0xff] %v573_v12  ;;  %v611_v12 = vperm.slane %v1635_v36, 2 }
 0x1c2   : > { %857 = vst [vmem:[#allocation1 + $0x5] ss:$9 sm:$0xff] %v574_v16  ;;  %v613_v16 = vperm.slane %v1635_v36, 4 }
 0x1c3   : > { %858 = vst [vmem:[#allocation1 + $0x6] ss:$9 sm:$0xff] %v575_v18  ;;  %v616_v18 = vperm.slane %v1635_v36, 7  ;;  %v622_v36 = vperm.slane %v1627_v27, 5 }
 0x1c4   : > { %859 = vst [vmem:[#allocation1 + $0x7] ss:$9 sm:$0xff] %v576_v21  ;;  %v618_v21 = vperm.slane %v1627_v27, 1 }
 0x1cb   : > { %v860_v25 = vld [vmem:[#allocation1] sm:$0xff] }
 0x1cc   : > { %861 = vst [vmem:[#allocation1] ss:$9 sm:$0xff] %v577_v22  ;;  %1021 = vperm.xlu0 %1353, %v860_v25   ;;  %v619_v22 = vperm.slane %v1627_v27, 2  ;;  %v621_v25 = vperm.slane %v1627_v27, 4 }
 0x1cd   : > { %862 = vst [vmem:[#allocation1 + $0x1] ss:$9 sm:$0xff] %v578_v23  ;;  %v620_v23 = vperm.slane %v1627_v27, 3 }
 0x1ce   : > { %863 = vst [vmem:[#allocation1 + $0x2] ss:$9 sm:$0xff] %v579_v24 }
 0x1cf   : > { %864 = vst [vmem:[#allocation1 + $0x3] ss:$9 sm:$0xff] %v580_v26  ;;  %v623_v26 = vperm.slane %v1627_v27, 6 }
 0x1d0   : > { %865 = vst [vmem:[#allocation1 + $0x4] ss:$9 sm:$0xff] %v581_v30  ;;  %v624_v30 = vperm.slane %v1627_v27, 7  ;;  %v630_v27 = vperm.slane %v1637_v40, 5 }
 0x1d1   : > { %866 = vst [vmem:[#allocation1 + $0x5] ss:$9 sm:$0xff] %v582_v7  ;;  %v625_v7 = vperm.slane %v1637_v40, 0 }
 0x1d2   : > { %867 = vst [vmem:[#allocation1 + $0x6] ss:$9 sm:$0xff] %v583_v31  ;;  %v626_v31 = vperm.slane %v1637_v40, 1 }
 0x1d3   : > { %868 = vst [vmem:[#allocation1 + $0x7] ss:$9 sm:$0xff] %v584_v32  ;;  %v627_v32 = vperm.slane %v1637_v40, 2 }
 0x1da   : > { %v869_v42 = vld [vmem:[#allocation1] sm:$0xff] }
 0x1db   : > { %870 = vst [vmem:[#allocation1] ss:$9 sm:$0xff] %v585_v39  ;;  %1024 = vperm.xlu2 %1352, %v869_v42   ;;  %v629_v39 = vperm.slane %v1637_v40, 4  ;;  %v633_v42 = vperm.slane %v1639_v43, 0 }
 0x1dc   : > { %871 = vst [vmem:[#allocation1 + $0x1] ss:$9 sm:$0xff] %v586_v41  ;;  %v631_v41 = vperm.slane %v1637_v40, 6 }
 0x1dd   : > { %872 = vst [vmem:[#allocation1 + $0x2] ss:$9 sm:$0xff] %v587_v19  ;;  %v632_v19 = vperm.slane %v1637_v40, 7  ;;  %v638_v40 = vperm.slane %v1639_v43, 5 }
 0x1de   : > { %873 = vst [vmem:[#allocation1 + $0x3] ss:$9 sm:$0xff] %v588_v0  ;;  %v634_v0 = vperm.slane %v1639_v43, 1 }
 0x1df   : > { %874 = vst [vmem:[#allocation1 + $0x4] ss:$9 sm:$0xff] %v589_v44  ;;  %v635_v44 = vperm.slane %v1639_v43, 2 }
 0x1e0   : > { %875 = vst [vmem:[#allocation1 + $0x5] ss:$9 sm:$0xff] %v590_v46  ;;  %v636_v46 = vperm.slane %v1639_v43, 3 }
 0x1e1   : > { %876 = vst [vmem:[#allocation1 + $0x6] ss:$9 sm:$0xff] %v591_v47 }
 0x1e2   : > { %877 = vst [vmem:[#allocation1 + $0x7] ss:$9 sm:$0xff] %v592_v48  ;;  %v637_v48 = vperm.slane %v1639_v43, 4 }
 0x1e9   : > { %v878_v55 = vld [vmem:[#allocation1] sm:$0xff] }
 0x1ea   : > { %879 = vst [vmem:[#allocation1] ss:$9 sm:$0xff] %v593_v49  ;;  %1027 = vperm.xlu1 %1354, %v878_v55   ;;  %v639_v49 = vperm.slane %v1639_v43, 6  ;;  %v643_v55 = vperm.slane %v1633_v33, 2 }
 0x1eb   : > { %880 = vst [vmem:[#allocation1 + $0x1] ss:$9 sm:$0xff] %v594_v51  ;;  %v640_v51 = vperm.slane %v1639_v43, 7  ;;  %v646_v43 = vperm.slane %v1633_v33, 5 }
 0x1ec   : > { %881 = vst [vmem:[#allocation1 + $0x2] ss:$9 sm:$0xff] %v595_v52  ;;  %v641_v52 = vperm.slane %v1633_v33, 0 }
 0x1ed   : > { %882 = vst [vmem:[#allocation1 + $0x3] ss:$9 sm:$0xff] %v596_v53  ;;  %v642_v53 = vperm.slane %v1633_v33, 1 }
 0x1ee   : > { %883 = vst [vmem:[#allocation1 + $0x4] ss:$9 sm:$0xff] %v597_v58  ;;  %v644_v58 = vperm.slane %v1633_v33, 3 }
 0x1ef   : > { %884 = vst [vmem:[#allocation1 + $0x5] ss:$9 sm:$0xff] %v598_v28 }
 0x1f0   : > { %885 = vst [vmem:[#allocation1 + $0x6] ss:$9 sm:$0xff] %v599_v61  ;;  %v645_v61 = vperm.slane %v1633_v33, 4 }
 0x1f1   : > { %886 = vst [vmem:[#allocation1 + $0x7] ss:$9 sm:$0xff] %v600_v62  ;;  %v647_v62 = vperm.slane %v1633_v33, 6 }
 0x1f8   : > { %v887_v4 = vld [vmem:[#allocation1] sm:$0xff] }
 0x1f9   : > { %888 = vst [vmem:[#allocation1] ss:$9 sm:$0xff] %v601_v63  ;;  %1030 = vperm.xlu0 %1353, %v887_v4   ;;  %v648_v63 = vperm.slane %v1633_v33, 7  ;;  %v651_v4 = vperm.slane %v1643_v45, 2  ;;  %v654_v33 = vperm.slane %v1643_v45, 5 }
 0x1fa   : > { %889 = vst [vmem:[#allocation1 + $0x1] ss:$9 sm:$0xff] %v602_v2  ;;  %v649_v2 = vperm.slane %v1643_v45, 0 }
 0x1fb   : > { %890 = vst [vmem:[#allocation1 + $0x2] ss:$9 sm:$0xff] %v603_v3  ;;  %v650_v3 = vperm.slane %v1643_v45, 1 }
 0x1fc   : > { %891 = vst [vmem:[#allocation1 + $0x3] ss:$9 sm:$0xff] %v604_v5  ;;  %v652_v5 = vperm.slane %v1643_v45, 3 }
 0x1fd   : > { %892 = vst [vmem:[#allocation1 + $0x4] ss:$9 sm:$0xff] %v605_v6 }
 0x1fe   : > { %893 = vst [vmem:[#allocation1 + $0x5] ss:$9 sm:$0xff] %v606_v15  ;;  %v653_v15 = vperm.slane %v1643_v45, 4 }
 0x1ff   : > { %894 = vst [vmem:[#allocation1 + $0x6] ss:$9 sm:$0xff] %v607_v8  ;;  %v655_v8 = vperm.slane %v1643_v45, 6 }
 0x200   : > { %895 = vst [vmem:[#allocation1 + $0x7] ss:$9 sm:$0xff] %v608_v9  ;;  %v656_v9 = vperm.slane %v1643_v45, 7  ;;  %v662_v45 = vperm.slane %v1650_v54, 5 }
 0x207   : > { %v896_v13 = vld [vmem:[#allocation1] sm:$0xff] }
 0x208   : > { %897 = vst [vmem:[#allocation1] ss:$9 sm:$0xff] %v609_v10  ;;  %1033 = vperm.xlu2 %1352, %v896_v13   ;;  %v657_v10 = vperm.slane %v1650_v54, 0  ;;  %v660_v13 = vperm.slane %v1650_v54, 3 }
 0x209   : > { %898 = vst [vmem:[#allocation1 + $0x1] ss:$9 sm:$0xff] %v610_v11  ;;  %v658_v11 = vperm.slane %v1650_v54, 1 }
 0x20a   : > { %899 = vst [vmem:[#allocation1 + $0x2] ss:$9 sm:$0xff] %v611_v12  ;;  %v659_v12 = vperm.slane %v1650_v54, 2 }
 0x20b   : > { %900 = vst [vmem:[#allocation1 + $0x3] ss:$9 sm:$0xff] %v612_v14 }
 0x20c   : > { %901 = vst [vmem:[#allocation1 + $0x4] ss:$9 sm:$0xff] %v613_v16  ;;  %v661_v16 = vperm.slane %v1650_v54, 4 }
 0x20d   : > { %902 = vst [vmem:[#allocation1 + $0x5] ss:$9 sm:$0xff] %v614_v29  ;;  %v663_v29 = vperm.slane %v1650_v54, 6 }
 0x20e   : > { %903 = vst [vmem:[#allocation1 + $0x6] ss:$9 sm:$0xff] %v615_v17  ;;  %v664_v17 = vperm.slane %v1650_v54, 7 }
 0x20f   : > { %904 = vst [vmem:[#allocation1 + $0x7] ss:$9 sm:$0xff] %v616_v18 }
 0x216   : > { %v905_v24 = vld [vmem:[#allocation1] sm:$0xff] }
 0x217   : > { %906 = vst [vmem:[#allocation1] ss:$9 sm:$0xff] %v617_v20  ;;  %1036 = vperm.xlu1 %1354, %v905_v24   ;;  %v980_v20 = vpop.permute.xlu2 %979 }
 0x218   : > { %907 = vst [vmem:[#allocation1 + $0x1] ss:$9 sm:$0xff] %v618_v21  ;;  %v983_v21 = vpop.permute.xlu1 %982 }
 0x219   : > { %908 = vst [vmem:[#allocation1 + $0x2] ss:$9 sm:$0xff] %v619_v22  ;;  %v986_v22 = vpop.permute.xlu0 %985 }
 0x21a   : > { %909 = vst [vmem:[#allocation1 + $0x3] ss:$9 sm:$0xff] %v620_v23 }
 0x21b   : > { %910 = vst [vmem:[#allocation1 + $0x4] ss:$9 sm:$0xff] %v621_v25 }
 0x21c   : > { %911 = vst [vmem:[#allocation1 + $0x5] ss:$9 sm:$0xff] %v622_v36 }
 0x21d   : > { %912 = vst [vmem:[#allocation1 + $0x6] ss:$9 sm:$0xff] %v623_v26 }
 0x21e   : > { %913 = vst [vmem:[#allocation1 + $0x7] ss:$9 sm:$0xff] %v624_v30 }
 0x21f   : > { %v1780_v23 = vpop.permute.xlu2 %988 }
 0x220   : > { %v1782_v24 = vpop.permute.xlu1 %991 }
 0x221   : > { %v1784_v25 = vpop.permute.xlu0 %994 }
 0x225   : > { %v914_v37 = vld [vmem:[#allocation1] sm:$0xff] }
 0x226   : > { %1039 = vperm.xlu0 %1353, %v914_v37   ;;  %915 = vst [vmem:[#allocation1] ss:$9 sm:$0xff] %v625_v7 }
 0x227   : > { %916 = vst [vmem:[#allocation1 + $0x1] ss:$9 sm:$0xff] %v626_v31  ;;  %v1786_v36 = vpop.permute.xlu2 %997 }
 0x228   : > { %917 = vst [vmem:[#allocation1 + $0x2] ss:$9 sm:$0xff] %v627_v32  ;;  %v1788_v26 = vpop.permute.xlu1 %1000 }
 0x229   : > { %918 = vst [vmem:[#allocation1 + $0x3] ss:$9 sm:$0xff] %v628_v35  ;;  %v1790_v54 = vpop.permute.xlu0 %1003 }
 0x22a   : > { %919 = vst [vmem:[#allocation1 + $0x4] ss:$9 sm:$0xff] %v629_v39  ;;  %v1441_v39 = vmov 0.0  }
 0x22b   : > { %920 = vst [vmem:[#allocation1 + $0x5] ss:$9 sm:$0xff] %v630_v27 }
 0x22c   : > { %921 = vst [vmem:[#allocation1 + $0x6] ss:$9 sm:$0xff] %v631_v41 }
 0x22d   : > { %922 = vst [vmem:[#allocation1 + $0x7] ss:$9 sm:$0xff] %v632_v19 }
 0x22e   : > { %210 = vst.msk [vmem:[#allocation2] sm:$0x3] %vm1795_vm6, %v1441_v39 }
 0x22f   : > { %v1792_v30 = vpop.permute.xlu2 %1006 }
 0x230   : > { %v1010_v7 = vpop.permute.xlu1 %1009 }
 0x231   : > { %v1013_v31 = vpop.permute.xlu0 %1012 }
 0x232   : > { %v1120_v19 = vperm.slane %v1013_v31, %v1657_v57 }
 0x234   : > { %v923_v47 = vld [vmem:[#allocation1] sm:$0xff] }
 0x235   : > { %1042 = vperm.xlu2 %1352, %v923_v47   ;;  %924 = vst [vmem:[#allocation1] ss:$9 sm:$0xff] %v633_v42 }
 0x236   : > { %925 = vst [vmem:[#allocation1 + $0x1] ss:$9 sm:$0xff] %v634_v0 }
 0x237   : > { %926 = vst [vmem:[#allocation1 + $0x2] ss:$9 sm:$0xff] %v635_v44  ;;  %v1016_v32 = vpop.permute.xlu2 %1015  ;;  %v1119_v44 = vperm.slane %v1010_v7, %v1654_v56 }
 0x238   : > { %927 = vst [vmem:[#allocation1 + $0x3] ss:$9 sm:$0xff] %v636_v46  ;;  %v1019_v37 = vpop.permute.xlu1 %1018  ;;  %v1122_v47 = vperm.slane %v1016_v32, %v1660_v59 }
 0x239   : > { %928 = vst [vmem:[#allocation1 + $0x4] ss:$9 sm:$0xff] %v637_v48  ;;  %v1121_v46 = vsel %vm1061_vm1, %v1120_v19, %v1119_v44  ;;  %v1124_v50 = vperm.slane %v1019_v37, %v1663_v60  ;;  %vm1151_vm1 = vcmask 1040384  }
 0x23a   : > { %929 = vst [vmem:[#allocation1 + $0x5] ss:$9 sm:$0xff] %v638_v40 }
 0x23b   : > { %930 = vst [vmem:[#allocation1 + $0x6] ss:$9 sm:$0xff] %v639_v49  ;;  %v1079_v49 = vadd.s32 4294967248, %v1654_v56 }
 0x23c   : > { %931 = vst [vmem:[#allocation1 + $0x7] ss:$9 sm:$0xff] %v640_v51  ;;  %v1123_v51 = vsel %vm1065_vm2, %v1122_v47, %v1121_v46 }
 0x23d   : > { %v1125_v57 = vsel %vm1069_vm3, %v1124_v50, %v1123_v51 }
 0x23e   : > { %v1022_v27 = vpop.permute.xlu0 %1021 }
 0x23f   : > { %v1025_v41 = vpop.permute.xlu2 %1024  ;;  %v1126_v48 = vperm.slane %v1022_v27, %v1668_v1  ;;  %v1080_v1 = vperm.slane %v980_v20, %v1079_v49  ;;  %v1111_v20 = vadd.s32 4294967184, %v1654_v56 }
 0x240   : > { %v1128_v59 = vperm.slane %v1025_v41, %v1694_v34 }
 0x241   : > { %v1082_v34 = vsel %vm1081_vm7, %v1080_v1, %v1698_v38  ;;  %v1112_v41 = vperm.slane %v1790_v54, %v1111_v20  ;;  %v376_v54 = vld [vmem:[#allocation2] sm:$0x3] }
 0x243   : > { %v932_v28 = vld [vmem:[#allocation1] sm:$0xff] }
 0x244   : > { %1045 = vperm.xlu1 %1354, %v932_v28   ;;  %933 = vst [vmem:[#allocation1] ss:$9 sm:$0xff] %v641_v52  ;;  %v1083_v52 = vadd.s32 4294967240, %v1654_v56 }
 0x245   : > { %934 = vst [vmem:[#allocation1 + $0x1] ss:$9 sm:$0xff] %v642_v53 }
 0x246   : > { %935 = vst [vmem:[#allocation1 + $0x2] ss:$9 sm:$0xff] %v643_v55  ;;  %v1087_v55 = vadd.s32 4294967232, %v1654_v56 }
 0x247   : > { %936 = vst [vmem:[#allocation1 + $0x3] ss:$9 sm:$0xff] %v644_v58  ;;  %v1127_v58 = vsel %vm1073_vm4, %v1126_v48, %v1125_v57 }
 0x248   : > { %937 = vst [vmem:[#allocation1 + $0x4] ss:$9 sm:$0xff] %v645_v61 }
 0x249   : > { %938 = vst [vmem:[#allocation1 + $0x5] ss:$9 sm:$0xff] %v646_v43  ;;  %v1091_v43 = vadd.s32 4294967224, %v1654_v56 }
 0x24a   : > { %939 = vst [vmem:[#allocation1 + $0x6] ss:$9 sm:$0xff] %v647_v62  ;;  %v1084_v62 = vperm.slane %v983_v21, %v1083_v52 }
 0x24b   : > { %940 = vst [vmem:[#allocation1 + $0x7] ss:$9 sm:$0xff] %v648_v63  ;;  %v1129_v63 = vsel %vm1077_vm5, %v1128_v59, %v1127_v58 }
 0x252   : > { %v941_v6 = vld [vmem:[#allocation1] sm:$0xff] }
 0x253   : > { %1048 = vperm.xlu0 %1353, %v941_v6   ;;  %942 = vst [vmem:[#allocation1] ss:$9 sm:$0xff] %v649_v2  ;;  %v1088_v2 = vperm.slane %v986_v22, %v1087_v55 }
 0x254   : > { %943 = vst [vmem:[#allocation1 + $0x1] ss:$9 sm:$0xff] %v650_v3  ;;  %v1095_v3 = vadd.s32 4294967216, %v1654_v56 }
 0x255   : > { %944 = vst [vmem:[#allocation1 + $0x2] ss:$9 sm:$0xff] %v651_v4 }
 0x256   : > { %945 = vst [vmem:[#allocation1 + $0x3] ss:$9 sm:$0xff] %v652_v5  ;;  %v1099_v5 = vadd.s32 4294967208, %v1654_v56 }
 0x257   : > { %946 = vst [vmem:[#allocation1 + $0x4] ss:$9 sm:$0xff] %v653_v15 }
 0x258   : > { %947 = vst [vmem:[#allocation1 + $0x5] ss:$9 sm:$0xff] %v654_v33 }
 0x259   : > { %948 = vst [vmem:[#allocation1 + $0x6] ss:$9 sm:$0xff] %v655_v8 }
 0x25a   : > { %949 = vst [vmem:[#allocation1 + $0x7] ss:$9 sm:$0xff] %v656_v9 }
 0x25c   : > { %v1028_v42 = vpop.permute.xlu1 %1027 }
 0x25d   : > { %v1130_v28 = vperm.slane %v1028_v42, %v1079_v49  ;;  %v1115_v42 = vadd.s32 4294967176, %v1654_v56 }
 0x25f   : > { %v1131_v4 = vsel %vm1081_vm7, %v1130_v28, %v1129_v63  ;;  %v1116_v49 = vperm.slane %v1792_v30, %v1115_v42 }
 0x261   : > { %v950_v14 = vld [vmem:[#allocation1] sm:$0xff] }
 0x262   : > { %1051 = vperm.xlu2 %1352, %v950_v14   ;;  %951 = vst [vmem:[#allocation1] ss:$9 sm:$0xff] %v657_v10  ;;  %v1034_v40 = vpop.permute.xlu2 %1033  ;;  %v1092_v10 = vperm.slane %v1780_v23, %v1091_v43  ;;  %v1103_v14 = vadd.s32 4294967200, %v1654_v56 }
 0x263   : > { %952 = vst [vmem:[#allocation1 + $0x1] ss:$9 sm:$0xff] %v658_v11  ;;  %v1134_v8 = vperm.slane %v1034_v40, %v1087_v55  ;;  %v1086_v11 = vsel %vm1085_vm8, %v1084_v62, %v1082_v34 }
 0x264   : > { %953 = vst [vmem:[#allocation1 + $0x2] ss:$9 sm:$0xff] %v659_v12 }
 0x265   : > { %954 = vst [vmem:[#allocation1 + $0x3] ss:$9 sm:$0xff] %v660_v13  ;;  %v1090_v13 = vsel %vm1089_vm9, %v1088_v2, %v1086_v11 }
 0x266   : > { %955 = vst [vmem:[#allocation1 + $0x4] ss:$9 sm:$0xff] %v661_v16  ;;  %v1096_v16 = vperm.slane %v1782_v24, %v1095_v3  ;;  %v1094_v23 = vsel %vm1093_vm10, %v1092_v10, %v1090_v13 }
 0x267   : > { %956 = vst [vmem:[#allocation1 + $0x5] ss:$9 sm:$0xff] %v662_v45 }
 0x268   : > { %957 = vst [vmem:[#allocation1 + $0x6] ss:$9 sm:$0xff] %v663_v29  ;;  %v1098_v32 = vsel %vm1097_vm11, %v1096_v16, %v1094_v23 }
 0x269   : > { %958 = vst [vmem:[#allocation1 + $0x7] ss:$9 sm:$0xff] %v664_v17  ;;  %v1100_v17 = vperm.slane %v1784_v25, %v1099_v5  ;;  %v1104_v25 = vperm.slane %v1786_v36, %v1103_v14 }
 0x26b   : > { %v1031_v0 = vpop.permute.xlu0 %1030  ;;  %v1102_v37 = vsel %vm1101_vm12, %v1100_v17, %v1098_v32 }
 0x26c   : > { %v1132_v61 = vperm.slane %v1031_v0, %v1083_v52  ;;  %v1106_v44 = vsel %vm1105_vm13, %v1104_v25, %v1102_v37 }
 0x26e   : > { %v1133_v6 = vsel %vm1085_vm8, %v1132_v61, %v1131_v4 }
 0x26f   : > { %v1135_v45 = vsel %vm1089_vm9, %v1134_v8, %v1133_v6 }
 0x270   : > { %v959_v18 = vld [vmem:[#allocation1] sm:$0xff] }
 0x271   : > { %1054 = vperm.xlu1 %1354, %v959_v18   ;;  %v1107_v18 = vadd.s32 4294967192, %v1654_v56 }
 0x273   : > { %v1108_v24 = vperm.slane %v1788_v26, %v1107_v18 }
 0x275   : > { %v1110_v47 = vsel %vm1109_vm14, %v1108_v24, %v1106_v44 }
 0x276   : > { %v1114_v40 = vsel %vm1113_vm15, %v1112_v41, %v1110_v47 }
 0x277   : > { %v1118_v52 = vsel %vm1117_vm0, %v1116_v49, %v1114_v40 }
 0x289   : > { %v1037_v53 = vpop.permute.xlu1 %1036 }
 0x28a   : > { %v1136_v33 = vperm.slane %v1037_v53, %v1091_v43 }
 0x28c   : > { %v1137_v38 = vsel %vm1093_vm10, %v1136_v33, %v1135_v45 }
 0x28f   : > { %v1043_v15 = vpop.permute.xlu2 %1042 }
 0x290   : > { %v1140_v7 = vperm.slane %v1043_v15, %v1099_v5 }
 0x298   : > { %v1040_v60 = vpop.permute.xlu0 %1039 }
 0x299   : > { %v1138_v9 = vperm.slane %v1040_v60, %v1095_v3 }
 0x29b   : > { %v1139_v21 = vsel %vm1097_vm11, %v1138_v9, %v1137_v38 }
 0x29c   : > { %v1141_v27 = vsel %vm1101_vm12, %v1140_v7, %v1139_v21 }
 0x2b6   : > { %v1046_v12 = vpop.permute.xlu1 %1045 }
 0x2b7   : > { %v1142_v22 = vperm.slane %v1046_v12, %v1103_v14 }
 0x2b9   : > { %v1143_v19 = vsel %vm1105_vm13, %v1142_v22, %v1141_v27 }
 0x2bc   : > { %v1052_v39 = vpop.permute.xlu2 %1051 }
 0x2bd   : > { %v1146_v46 = vperm.slane %v1052_v39, %v1111_v20 }
 0x2c5   : > { %v1049_v29 = vpop.permute.xlu0 %1048 }
 0x2c6   : > { %v1144_v31 = vperm.slane %v1049_v29, %v1107_v18 }
 0x2c8   : > { %v1145_v0 = vsel %vm1109_vm14, %v1144_v31, %v1143_v19 }
 0x2c9   : > { %v1147_v26 = vsel %vm1113_vm15, %v1146_v46, %v1145_v0 }
 0x2e3   : > { %v1055_v50 = vpop.permute.xlu1 %1054 }
 0x2e4   : > { %v1148_v48 = vperm.slane %v1055_v50, %v1115_v42 }
 0x2e6   : > { %v1149_v36 = vsel %vm1117_vm0, %v1148_v48, %v1147_v26 }
 0x2e7   : > { %v1150_v51 = vrot.slane %v1149_v36, 7 }
 0x2e9   : > { %v1152_v56 = vsel %vm1151_vm1, %v1118_v52, %v1150_v51 }
 0x2ea   : > { %v1154_v57 = vadd.f32 %v1152_v56, %v376_v54 }
 0x2ec   : > { %1159 = vst.msk [vmem:[#allocation2] sm:$0x3] %vm1795_vm6, %v1154_v57 }
 0x2f3   : > { %v1163_v53 = vld [vmem:[#allocation2] sm:$0x3] }
 0x2f4   : > { %v1164_v55 = vsub.f32 0.0, %v1163_v53 }
 0x2f6   : > { %v1165_v58 = vmul.f32 1.442695, %v1164_v55 }
 0x2f8   : > { %1356 = vpow2.f32 %v1165_v58 }
 0x2fe   : > { %v1357_v28 = vpop.eup %1356 }
 0x2ff   : > { %v1167_v60 = vadd.f32 1.0, %v1357_v28 }
 0x301   : > { %1358 = vrcp.f32 %v1167_v60  ;;  %v1179_v1 = vand.u32 2147483648, %v1167_v60  ;;  %v1177_v62 = vand.u32 2147483647, %v1167_v60  ;;  %vm1173_vm3 = vweird.f32 %v1167_v60 }
 0x303   : > { %v1180_v2 = vor.u32 1.1754944e-38, %v1179_v1  ;;  %vm1178_vm5 = vcmp.eq.f32.partialorder %v1177_v62, 8.507059e+37 }
 0x307   : > { %v1359_v30 = vpop.eup %1358 }
 0x308   : > { %v1169_v59 = vmul.f32 %v1359_v30, %v1167_v60  ;;  %vm1174_vm2 = vweird.f32 %v1359_v30 }
 0x309   : > { %vm1175_vm4 = vmor %vm1173_vm3, %vm1174_vm2 }
 0x30a   : > { %v1170_v61 = vsub.f32 1.0, %v1169_v59 }
 0x30c   : > { %v1171_v43 = vmul.f32 %v1359_v30, %v1170_v61 }
 0x30e   : > { %v1172_v63 = vadd.f32 %v1359_v30, %v1171_v43 }
 0x310   : > { %v1176_v3 = vsel %vm1175_vm4, %v1359_v30, %v1172_v63 }
 0x311   : > { %v1181_v4 = vsel %vm1178_vm5, %v1180_v2, %v1176_v3 }
 0x312   : > { %1183 = vst.msk [vmem:[%s180_s8] sm:$0x3] %vm1795_vm6, %v1181_v4 }
 0x313   : > { %1387 = shalt.err (!%p1384_p5)
}
 0x314   : > { %1295 = dma.vmem_to_hbm [thread:$0]  (%p1497_p4), %s1198_s15, 32, %s1200_s16, %s1185_s12  }
 0x315 PF: > { %p1301_p6 = scmp.ge.s32.totalorder %s1438_s14, 2  ;;  %s1211_s28 = sand.u32 1, %s1418_s9  }
 0x316   : > { %s1212_s29 = scalar_lea.sflag [#allocation4], %s1211_s28 }
 0x317   : > { %p1298_p7 = pnand %p1301_p6, %p1504_p8 }
 0x319   : > { %p1299_p9 = pneg %p1298_p7 }
 0x31b   : > { %1413 = dma.done.wait (%p1299_p9), %s1212_s29, 32  }
 0x31c   : > { %1415 = vsyncadd (%p1299_p9), %s1212_s29, 4294967264  ;;  %s15_s14 = sadd.s32 1, %s1438_s14   ;;  %s1878_s9 = smov %s1422_s10 }
 0x31d   : > { %p12_p10 = scmp.ge.s32.totalorder %s15_s14, 4   ;;  %s1879_s10 = smov %s1426_s11 }
 0x31e   : > { %s1880_s11 = smov %s1510_s22  ;;  %s1881_s12 = smov %s1434_s13 }
 0x31f   : > { %s1882_s13 = smov %s1884_s17  ;;  %14 = sbr.rel (!%p12_p10) target bundleno = 4 (0x4), region = 81 }
 0x324   :  { %1218 = vsyncpa [#allocation4], 1 }
 0x325   :  { %1220 = vsyncpa [#allocation4 + $0x1], 1 }

</bundles_post_ra>
